<compile_context>
chip_gen: v6e
topology: v6e:2x2x1
jax: 0.10.0
libtpu: 0.0.40
codegen_flags: <defaults>
</compile_context>

<pallas_src>
import functools
import math

import jax
import jax.numpy as jnp
from jax.experimental import pallas as pl
from jax.experimental.pallas import tpu as pltpu


# ----------------------------- tiling helpers ------------------------------ #

def _seq_tile(seq_len, target=256):
    """Sequence tile: a divisor of S close to `target`, or the full S."""
    if seq_len <= target:
        return seq_len
    t = target
    while t >= 8:
        if seq_len % t == 0:
            return t
        t //= 2
    return seq_len


def _ff_chunk(hidden, target=512):
    """FFN hidden-dim chunk: divisor of Eh close to `target`, or full Eh."""
    if hidden <= target:
        return hidden
    c = target
    while c >= 128:
        if hidden % c == 0:
            return c
        c //= 2
    return hidden


# ------------------------------ Pallas kernel ------------------------------ #

def decoder_block_kernel(xq_ref, xkv_ref,
                         wqkv_ref, bqkv_ref, wo_ref, bo_ref,
                         ln1g_ref, ln1b_ref,
                         w1_ref, b1_ref, w2_ref, b2_ref,
                         ln2g_ref, ln2b_ref,
                         o_ref,
                         q_sc, m_sc, l_sc, acc_sc, k_sc, v_sc,
                         *, num_heads, ff_chunk):
    H = num_heads
    TQ, E = xq_ref.shape[1], xq_ref.shape[2]
    TK = xkv_ref.shape[1]
    Dh = E // H
    scale = 1.0 / math.sqrt(Dh)

    qi = pl.program_id(1)          # query-tile index
    ki = pl.program_id(2)          # kv-tile index (reduction axis)
    n_kv = pl.num_programs(2)

    def split_heads(t):            # (T, E) -> (H, T, Dh)
        return jnp.concatenate(
            [t[None, :, h * Dh:(h + 1) * Dh] for h in range(H)], axis=0)

    def merge_heads(t):            # (H, T, Dh) -> (T, E)
        return jnp.concatenate([t[h] for h in range(H)], axis=-1)

    def layernorm(v, g_ref, b_ref):
        mu = jnp.mean(v, axis=-1, keepdims=True)
        var = jnp.mean(jnp.square(v - mu), axis=-1, keepdims=True)
        return ((v - mu) * jax.lax.rsqrt(var + 1e-5)
                * g_ref[...].astype(jnp.float32)
                + b_ref[...].astype(jnp.float32))

    # ---- first query tile of each batch element: project K/V for this kv
    #      tile once and cache it in VMEM for reuse by every later query tile.
    @pl.when(qi == 0)
    def _project_kv():
        kv = jnp.dot(xkv_ref[0], wqkv_ref[:, E:],
                     preferred_element_type=jnp.float32)          # (TK, 2E)
        kv = kv + bqkv_ref[:, E:].astype(jnp.float32)
        k_sc[ki] = split_heads(kv[:, :E]).astype(k_sc.dtype)      # (H, TK, Dh)
        v_sc[ki] = split_heads(kv[:, E:]).astype(v_sc.dtype)

    # ---- kv step 0: project Q for this query tile once, reset softmax state.
    @pl.when(ki == 0)
    def _init():
        q = jnp.dot(xq_ref[0], wqkv_ref[:, :E],
                    preferred_element_type=jnp.float32)
        q = (q + bqkv_ref[:, :E].astype(jnp.float32)) * scale
        q_sc[...] = split_heads(q).astype(q_sc.dtype)
        m_sc[...] = jnp.full(m_sc.shape, -jnp.inf, jnp.float32)
        l_sc[...] = jnp.zeros(l_sc.shape, jnp.float32)
        acc_sc[...] = jnp.zeros(acc_sc.shape, jnp.float32)

    # ---- online-softmax update for this kv tile; skip fully-masked tiles.
    @pl.when(ki * TK <= qi * TQ + (TQ - 1))
    def _attend():
        k = k_sc[ki]                                               # (H, TK, Dh)
        v = v_sc[ki]

        s = jnp.einsum('hqd,hkd->hqk', q_sc[...], k,
                       preferred_element_type=jnp.float32)         # (H, TQ, TK)
        q_pos = qi * TQ + jax.lax.broadcasted_iota(jnp.int32, (1, TQ, TK), 1)
        k_pos = ki * TK + jax.lax.broadcasted_iota(jnp.int32, (1, TQ, TK), 2)
        s = jnp.where(q_pos >= k_pos, s, jnp.float32(-1e30))

        m_prev = m_sc[...]
        m_new = jnp.maximum(m_prev, jnp.max(s, axis=-1, keepdims=True))
        alpha = jnp.exp(m_prev - m_new)
        p = jnp.exp(s - m_new)
        l_sc[...] = alpha * l_sc[...] + jnp.sum(p, axis=-1, keepdims=True)
        acc_sc[...] = alpha * acc_sc[...] + jnp.einsum(
            'hqk,hkd->hqd', p.astype(jnp.bfloat16), v,
            preferred_element_type=jnp.float32)
        m_sc[...] = m_new

    # ---- last kv tile: output proj, add&LN, chunked FFN, add&LN, store.
    @pl.when(ki == n_kv - 1)
    def _finalize():
        ctx = acc_sc[...] * pl.reciprocal(l_sc[...], approx=True)  # (H,TQ,Dh)
        ctx = merge_heads(ctx).astype(jnp.bfloat16)                # (TQ, E)
        attn = (jnp.dot(ctx, wo_ref[...], preferred_element_type=jnp.float32)
                + bo_ref[...].astype(jnp.float32))
        x = xq_ref[0].astype(jnp.float32)
        y = layernorm(x + attn, ln1g_ref, ln1b_ref)

        yb = y.astype(jnp.bfloat16)
        Eh = w1_ref.shape[1]
        ff = jnp.zeros((TQ, E), jnp.float32)
        for c in range(0, Eh, ff_chunk):                # static chunk loop
            h1 = jnp.dot(yb, w1_ref[:, c:c + ff_chunk],
                         preferred_element_type=jnp.float32)
            h1 = jnp.maximum(
                h1 + b1_ref[:, c:c + ff_chunk].astype(jnp.float32), 0.0)
            ff = ff + jnp.dot(h1.astype(jnp.bfloat16),
                              w2_ref[c:c + ff_chunk, :],
                              preferred_element_type=jnp.float32)
        ff = ff + b2_ref[...].astype(jnp.float32)
        # TODO(synk): FFN dropout is identity here (eval-mode semantics).
        z = layernorm(y + ff, ln2g_ref, ln2b_ref)
        o_ref[0] = z.astype(o_ref.dtype)


# ------------------------------ JAX wrapper -------------------------------- #

def decoder_block(x, params, num_heads):
    """x: (B, S, E) bf16 -> (B, S, E) bf16, one DecoderBlock."""
    B, S, E = x.shape
    assert E % num_heads == 0
    Dh = E // num_heads
    TQ = _seq_tile(S)
    TK = _seq_tile(S)
    n_kv = S // TK
    Eh = params["w1"].shape[1]
    fc = _ff_chunk(Eh)

    weight_order = ["wqkv", "bqkv", "wo", "bo", "ln1g", "ln1b",
                    "w1", "b1", "w2", "b2", "ln2g", "ln2b"]
    weights = [params[n] for n in weight_order]

    def _wspec(shape):
        nd = len(shape)
        return pl.BlockSpec(shape, lambda b, q, k, _nd=nd: (0,) * _nd)

    kernel = functools.partial(decoder_block_kernel,
                               num_heads=num_heads, ff_chunk=fc)

    return pl.pallas_call(
        kernel,
        out_shape=jax.ShapeDtypeStruct((B, S, E), x.dtype),
        grid_spec=pltpu.PrefetchScalarGridSpec(
            num_scalar_prefetch=0,
            grid=(B, S // TQ, n_kv),
            in_specs=[pl.BlockSpec((1, TQ, E), lambda b, q, k: (b, q, 0)),
                      pl.BlockSpec((1, TK, E), lambda b, q, k: (b, k, 0))]
                     + [_wspec(w.shape) for w in weights],
            out_specs=pl.BlockSpec((1, TQ, E), lambda b, q, k: (b, q, 0)),
            scratch_shapes=[
                pltpu.VMEM((num_heads, TQ, Dh), jnp.bfloat16),   # scaled Q heads
                pltpu.VMEM((num_heads, TQ, 1), jnp.float32),     # running max
                pltpu.VMEM((num_heads, TQ, 1), jnp.float32),     # running sum
                pltpu.VMEM((num_heads, TQ, Dh), jnp.float32),    # context acc
                pltpu.VMEM((n_kv, num_heads, TK, Dh), jnp.bfloat16),  # K cache
                pltpu.VMEM((n_kv, num_heads, TK, Dh), jnp.bfloat16),  # V cache
            ]),
        compiler_params=pltpu.CompilerParams(
            # q axis must be sequential so the per-batch K/V cache (filled at
            # qi == 0) is valid for every later query tile on the same core.
            dimension_semantics=("parallel", "arbitrary", "arbitrary"),
            vmem_limit_bytes=48 * 1024 * 1024),
    )(x, x, *weights)


def sinusoidal_pe(seq_len, dim):
    pos = jnp.arange(seq_len, dtype=jnp.float32)[:, None]
    i = jnp.arange(dim, dtype=jnp.float32)[None, :]
    angle = pos / jnp.power(10000.0, (2.0 * jnp.floor(i / 2.0)) / dim)
    pe = jnp.where((jnp.arange(dim) % 2) == 0, jnp.sin(angle), jnp.cos(angle))
    return pe  # (S, E) float32


def init_block_params(key, embedding_dim, expansion_factor):
    E = embedding_dim
    Eh = E * expansion_factor
    ks = jax.random.split(key, 4)
    s_e = 1.0 / math.sqrt(E)
    s_h = 1.0 / math.sqrt(Eh)
    dt = jnp.bfloat16
    return {
        # fused Q/K/V projection: columns [0:E] = Q, [E:2E] = K, [2E:3E] = V
        "wqkv": (jax.random.normal(ks[0], (E, 3 * E), jnp.float32) * s_e).astype(dt),
        "bqkv": jnp.zeros((1, 3 * E), dt),
        "wo": (jax.random.normal(ks[1], (E, E), jnp.float32) * s_e).astype(dt),
        "bo": jnp.zeros((1, E), dt),
        "ln1g": jnp.ones((1, E), dt),
        "ln1b": jnp.zeros((1, E), dt),
        "w1": (jax.random.normal(ks[2], (E, Eh), jnp.float32) * s_e).astype(dt),
        "b1": jnp.zeros((1, Eh), dt),
        "w2": (jax.random.normal(ks[3], (Eh, E), jnp.float32) * s_h).astype(dt),
        "b2": jnp.zeros((1, E), dt),
        "ln2g": jnp.ones((1, E), dt),
        "ln2b": jnp.zeros((1, E), dt),
    }


def gpt_decoder_forward(token_ids, emb_table, pe, block_params, num_heads):
    """token_ids: (B, S) int32 -> (B, S, E) float32."""
    E = emb_table.shape[1]
    # EmbeddingLayer: lookup scaled by sqrt(E); PositionalEncoder: add PE.
    x = emb_table[token_ids].astype(jnp.float32) * math.sqrt(E) + pe[None, :, :]
    x = x.astype(jnp.bfloat16)          # bf16 activations, f32 accumulation
    for params in block_params:
        x = decoder_block(x, params, num_heads)
    return x.astype(jnp.float32)


# --------------------------------- main ------------------------------------ #

if __name__ == "__main__":
    # Small shapes consistent with the module's forward.
    batch_size = 2
    seq_len = 8
    vocab_size = 100
    embedding_dim = 32
    no_heads = 4
    expansion_factor = 4
    no_decoder_blocks = 2

    key = jax.random.PRNGKey(0)
    k_tok, k_emb, k_blocks = jax.random.split(key, 3)

    token_ids = jax.random.randint(k_tok, (batch_size, seq_len), 0, vocab_size,
                                   dtype=jnp.int32)
    emb_table = jax.random.normal(k_emb, (vocab_size, embedding_dim),
                                  jnp.float32) * 0.02
    pe = sinusoidal_pe(seq_len, embedding_dim)

    block_keys = jax.random.split(k_blocks, no_decoder_blocks)
    block_params = [init_block_params(bk, embedding_dim, expansion_factor)
                    for bk in block_keys]

    fwd = jax.jit(functools.partial(gpt_decoder_forward, num_heads=no_heads))
    out = jax.block_until_ready(fwd(token_ids, emb_table, pe, block_params))

    assert out.shape == (batch_size, seq_len, embedding_dim), out.shape
    assert bool(jnp.all(jnp.isfinite(out)))
    print("KERNEL_OK")
</pallas_src>

<mosaic_0001>
module attributes {stable_mosaic.version = 11 : i64} {
  func.func @decoder_block_kernel(%arg0: i32, %arg1: i32, %arg2: i32, %arg3: memref<1x8x32xbf16, #tpu.memory_space<vmem>>, %arg4: memref<1x8x32xbf16, #tpu.memory_space<vmem>>, %arg5: memref<32x96xbf16, #tpu.memory_space<vmem>>, %arg6: memref<1x96xbf16, #tpu.memory_space<vmem>>, %arg7: memref<32x32xbf16, #tpu.memory_space<vmem>>, %arg8: memref<1x32xbf16, #tpu.memory_space<vmem>>, %arg9: memref<1x32xbf16, #tpu.memory_space<vmem>>, %arg10: memref<1x32xbf16, #tpu.memory_space<vmem>>, %arg11: memref<32x128xbf16, #tpu.memory_space<vmem>>, %arg12: memref<1x128xbf16, #tpu.memory_space<vmem>>, %arg13: memref<128x32xbf16, #tpu.memory_space<vmem>>, %arg14: memref<1x32xbf16, #tpu.memory_space<vmem>>, %arg15: memref<1x32xbf16, #tpu.memory_space<vmem>>, %arg16: memref<1x32xbf16, #tpu.memory_space<vmem>>, %arg17: memref<1x8x32xbf16, #tpu.memory_space<vmem>>, %arg18: memref<4x8x8xbf16, #tpu.memory_space<vmem>>, %arg19: memref<4x8x1xf32, #tpu.memory_space<vmem>>, %arg20: memref<4x8x1xf32, #tpu.memory_space<vmem>>, %arg21: memref<4x8x8xf32, #tpu.memory_space<vmem>>, %arg22: memref<1x4x8x8xbf16, #tpu.memory_space<vmem>>, %arg23: memref<1x4x8x8xbf16, #tpu.memory_space<vmem>>) attributes {dimension_semantics = [#tpu.dimension_semantics<parallel>, #tpu.dimension_semantics<arbitrary>, #tpu.dimension_semantics<arbitrary>], iteration_bounds = array<i64: 2, 1, 1>, scalar_prefetch = 0 : i64, scratch_operands = 6 : i64, tpu.core_type = #tpu.core_type<tc>, window_params = [{transform_indices = @transform_0, window_bounds = array<i64: 1, 8, 32>}, {transform_indices = @transform_1, window_bounds = array<i64: 1, 8, 32>}, {pipeline_mode = #tpu.pipeline_mode<synchronous>, transform_indices = @transform_2, window_bounds = array<i64: 32, 96>}, {pipeline_mode = #tpu.pipeline_mode<synchronous>, transform_indices = @transform_3, window_bounds = array<i64: 1, 96>}, {pipeline_mode = #tpu.pipeline_mode<synchronous>, transform_indices = @transform_4, window_bounds = array<i64: 32, 32>}, {pipeline_mode = #tpu.pipeline_mode<synchronous>, transform_indices = @transform_5, window_bounds = array<i64: 1, 32>}, {pipeline_mode = #tpu.pipeline_mode<synchronous>, transform_indices = @transform_6, window_bounds = array<i64: 1, 32>}, {pipeline_mode = #tpu.pipeline_mode<synchronous>, transform_indices = @transform_7, window_bounds = array<i64: 1, 32>}, {pipeline_mode = #tpu.pipeline_mode<synchronous>, transform_indices = @transform_8, window_bounds = array<i64: 32, 128>}, {pipeline_mode = #tpu.pipeline_mode<synchronous>, transform_indices = @transform_9, window_bounds = array<i64: 1, 128>}, {pipeline_mode = #tpu.pipeline_mode<synchronous>, transform_indices = @transform_10, window_bounds = array<i64: 128, 32>}, {pipeline_mode = #tpu.pipeline_mode<synchronous>, transform_indices = @transform_11, window_bounds = array<i64: 1, 32>}, {pipeline_mode = #tpu.pipeline_mode<synchronous>, transform_indices = @transform_12, window_bounds = array<i64: 1, 32>}, {pipeline_mode = #tpu.pipeline_mode<synchronous>, transform_indices = @transform_13, window_bounds = array<i64: 1, 32>}, {transform_indices = @transform_14, window_bounds = array<i64: 1, 8, 32>}]} {
    %c0_i32 = arith.constant 0 : i32
    %0 = arith.cmpi eq, %arg1, %c0_i32 : i32
    %1 = arith.extui %0 : i1 to i32
    %c0_i32_0 = arith.constant 0 : i32
    %2 = arith.cmpi ne, %1, %c0_i32_0 : i32
    scf.if %2 {
      %c0 = arith.constant 0 : index
      %c0_7 = arith.constant 0 : index
      %c0_8 = arith.constant 0 : index
      %15 = vector.load %arg4[%c0, %c0_7, %c0_8] : memref<1x8x32xbf16, #tpu.memory_space<vmem>>, vector<1x8x32xbf16>
      %16 = vector.shape_cast %15 : vector<1x8x32xbf16> to vector<8x32xbf16>
      %c0_9 = arith.constant 0 : index
      %c32 = arith.constant 32 : index
      %17 = vector.load %arg5[%c0_9, %c32] : memref<32x96xbf16, #tpu.memory_space<vmem>>, vector<32x64xbf16>
      %cst = arith.constant dense<0.000000e+00> : vector<8x64xf32>
      %18 = tpu.matmul %16, %17, %cst {dimension_numbers = #tpu.dot_dimension_numbers<[1], [0], [0], [1], [0, 0, 1, 1], [], []>} : vector<8x32xbf16>, vector<32x64xbf16>, vector<8x64xf32> -> vector<8x64xf32>
      %c0_10 = arith.constant 0 : index
      %c32_11 = arith.constant 32 : index
      %19 = vector.load %arg6[%c0_10, %c32_11] : memref<1x96xbf16, #tpu.memory_space<vmem>>, vector<1x64xbf16>
      %20 = arith.extf %19 : vector<1x64xbf16> to vector<1x64xf32>
      %21 = vector.broadcast %20 : vector<1x64xf32> to vector<8x64xf32>
      %22 = arith.addf %18, %21 : vector<8x64xf32>
      %23 = vector.extract_strided_slice %22 {offsets = [0, 0], sizes = [8, 32], strides = [1, 1]} : vector<8x64xf32> to vector<8x32xf32>
      %24 = vector.extract_strided_slice %23 {offsets = [0, 0], sizes = [8, 8], strides = [1, 1]} : vector<8x32xf32> to vector<8x8xf32>
      %25 = vector.shape_cast %24 : vector<8x8xf32> to vector<1x8x8xf32>
      %26 = vector.extract_strided_slice %23 {offsets = [0, 8], sizes = [8, 8], strides = [1, 1]} : vector<8x32xf32> to vector<8x8xf32>
      %27 = vector.shape_cast %26 : vector<8x8xf32> to vector<1x8x8xf32>
      %28 = vector.extract_strided_slice %23 {offsets = [0, 16], sizes = [8, 8], strides = [1, 1]} : vector<8x32xf32> to vector<8x8xf32>
      %29 = vector.shape_cast %28 : vector<8x8xf32> to vector<1x8x8xf32>
      %30 = vector.extract_strided_slice %23 {offsets = [0, 24], sizes = [8, 8], strides = [1, 1]} : vector<8x32xf32> to vector<8x8xf32>
      %31 = vector.shape_cast %30 : vector<8x8xf32> to vector<1x8x8xf32>
      %32 = tpu.concatenate %25, %27, %29, %31 in 0 : vector<1x8x8xf32>, vector<1x8x8xf32>, vector<1x8x8xf32>, vector<1x8x8xf32> -> vector<4x8x8xf32>
      %33 = arith.truncf %32 : vector<4x8x8xf32> to vector<4x8x8xbf16>
      %34 = arith.index_cast %arg2 : i32 to index
      %c0_12 = arith.constant 0 : index
      %c0_13 = arith.constant 0 : index
      %c0_14 = arith.constant 0 : index
      %35 = vector.load %arg22[%34, %c0_12, %c0_13, %c0_14] : memref<1x4x8x8xbf16, #tpu.memory_space<vmem>>, vector<1x4x8x8xbf16>
      %36 = vector.shape_cast %35 : vector<1x4x8x8xbf16> to vector<4x8x8xbf16>
      %37 = vector.shape_cast %33 : vector<4x8x8xbf16> to vector<1x4x8x8xbf16>
      tpu.vector_store %arg22[%34, %c0_12, %c0_13, %c0_14], %37 {strides = array<i32>} : memref<1x4x8x8xbf16, #tpu.memory_space<vmem>>, vector<1x4x8x8xbf16>,
      %38 = vector.extract_strided_slice %22 {offsets = [0, 32], sizes = [8, 32], strides = [1, 1]} : vector<8x64xf32> to vector<8x32xf32>
      %39 = vector.extract_strided_slice %38 {offsets = [0, 0], sizes = [8, 8], strides = [1, 1]} : vector<8x32xf32> to vector<8x8xf32>
      %40 = vector.shape_cast %39 : vector<8x8xf32> to vector<1x8x8xf32>
      %41 = vector.extract_strided_slice %38 {offsets = [0, 8], sizes = [8, 8], strides = [1, 1]} : vector<8x32xf32> to vector<8x8xf32>
      %42 = vector.shape_cast %41 : vector<8x8xf32> to vector<1x8x8xf32>
      %43 = vector.extract_strided_slice %38 {offsets = [0, 16], sizes = [8, 8], strides = [1, 1]} : vector<8x32xf32> to vector<8x8xf32>
      %44 = vector.shape_cast %43 : vector<8x8xf32> to vector<1x8x8xf32>
      %45 = vector.extract_strided_slice %38 {offsets = [0, 24], sizes = [8, 8], strides = [1, 1]} : vector<8x32xf32> to vector<8x8xf32>
      %46 = vector.shape_cast %45 : vector<8x8xf32> to vector<1x8x8xf32>
      %47 = tpu.concatenate %40, %42, %44, %46 in 0 : vector<1x8x8xf32>, vector<1x8x8xf32>, vector<1x8x8xf32>, vector<1x8x8xf32> -> vector<4x8x8xf32>
      %48 = arith.truncf %47 : vector<4x8x8xf32> to vector<4x8x8xbf16>
      %49 = arith.index_cast %arg2 : i32 to index
      %c0_15 = arith.constant 0 : index
      %c0_16 = arith.constant 0 : index
      %c0_17 = arith.constant 0 : index
      %50 = vector.load %arg23[%49, %c0_15, %c0_16, %c0_17] : memref<1x4x8x8xbf16, #tpu.memory_space<vmem>>, vector<1x4x8x8xbf16>
      %51 = vector.shape_cast %50 : vector<1x4x8x8xbf16> to vector<4x8x8xbf16>
      %52 = vector.shape_cast %48 : vector<4x8x8xbf16> to vector<1x4x8x8xbf16>
      tpu.vector_store %arg23[%49, %c0_15, %c0_16, %c0_17], %52 {strides = array<i32>} : memref<1x4x8x8xbf16, #tpu.memory_space<vmem>>, vector<1x4x8x8xbf16>,
    } else {
    }
    %c0_i32_1 = arith.constant 0 : i32
    %3 = arith.cmpi eq, %arg2, %c0_i32_1 : i32
    %4 = arith.extui %3 : i1 to i32
    %c0_i32_2 = arith.constant 0 : i32
    %5 = arith.cmpi ne, %4, %c0_i32_2 : i32
    scf.if %5 {
      %c0 = arith.constant 0 : index
      %c0_7 = arith.constant 0 : index
      %c0_8 = arith.constant 0 : index
      %15 = vector.load %arg3[%c0, %c0_7, %c0_8] : memref<1x8x32xbf16, #tpu.memory_space<vmem>>, vector<1x8x32xbf16>
      %16 = vector.shape_cast %15 : vector<1x8x32xbf16> to vector<8x32xbf16>
      %c0_9 = arith.constant 0 : index
      %c0_10 = arith.constant 0 : index
      %17 = vector.load %arg5[%c0_9, %c0_10] : memref<32x96xbf16, #tpu.memory_space<vmem>>, vector<32x32xbf16>
      %cst = arith.constant dense<0.000000e+00> : vector<8x32xf32>
      %18 = tpu.matmul %16, %17, %cst {dimension_numbers = #tpu.dot_dimension_numbers<[1], [0], [0], [1], [0, 0, 1, 1], [], []>} : vector<8x32xbf16>, vector<32x32xbf16>, vector<8x32xf32> -> vector<8x32xf32>
      %c0_11 = arith.constant 0 : index
      %c0_12 = arith.constant 0 : index
      %19 = vector.load %arg6[%c0_11, %c0_12] : memref<1x96xbf16, #tpu.memory_space<vmem>>, vector<1x32xbf16>
      %20 = arith.extf %19 : vector<1x32xbf16> to vector<1x32xf32>
      %21 = vector.broadcast %20 : vector<1x32xf32> to vector<8x32xf32>
      %22 = arith.addf %18, %21 : vector<8x32xf32>
      %cst_13 = arith.constant 0.353553385 : f32
      %23 = vector.broadcast %cst_13 : f32 to vector<8x32xf32>
      %24 = arith.mulf %22, %23 : vector<8x32xf32>
      %25 = vector.extract_strided_slice %24 {offsets = [0, 0], sizes = [8, 8], strides = [1, 1]} : vector<8x32xf32> to vector<8x8xf32>
      %26 = vector.shape_cast %25 : vector<8x8xf32> to vector<1x8x8xf32>
      %27 = vector.extract_strided_slice %24 {offsets = [0, 8], sizes = [8, 8], strides = [1, 1]} : vector<8x32xf32> to vector<8x8xf32>
      %28 = vector.shape_cast %27 : vector<8x8xf32> to vector<1x8x8xf32>
      %29 = vector.extract_strided_slice %24 {offsets = [0, 16], sizes = [8, 8], strides = [1, 1]} : vector<8x32xf32> to vector<8x8xf32>
      %30 = vector.shape_cast %29 : vector<8x8xf32> to vector<1x8x8xf32>
      %31 = vector.extract_strided_slice %24 {offsets = [0, 24], sizes = [8, 8], strides = [1, 1]} : vector<8x32xf32> to vector<8x8xf32>
      %32 = vector.shape_cast %31 : vector<8x8xf32> to vector<1x8x8xf32>
      %33 = tpu.concatenate %26, %28, %30, %32 in 0 : vector<1x8x8xf32>, vector<1x8x8xf32>, vector<1x8x8xf32>, vector<1x8x8xf32> -> vector<4x8x8xf32>
      %34 = arith.truncf %33 : vector<4x8x8xf32> to vector<4x8x8xbf16>
      %c0_14 = arith.constant 0 : index
      %c0_15 = arith.constant 0 : index
      %c0_16 = arith.constant 0 : index
      %35 = vector.load %arg18[%c0_14, %c0_15, %c0_16] : memref<4x8x8xbf16, #tpu.memory_space<vmem>>, vector<4x8x8xbf16>
      tpu.vector_store %arg18[%c0_14, %c0_15, %c0_16], %34 {strides = array<i32>} : memref<4x8x8xbf16, #tpu.memory_space<vmem>>, vector<4x8x8xbf16>,
      %cst_17 = arith.constant 0xFF800000 : f32
      %36 = vector.broadcast %cst_17 : f32 to vector<4x8x1xf32>
      %c0_18 = arith.constant 0 : index
      %c0_19 = arith.constant 0 : index
      %c0_20 = arith.constant 0 : index
      %37 = vector.load %arg19[%c0_18, %c0_19, %c0_20] : memref<4x8x1xf32, #tpu.memory_space<vmem>>, vector<4x8x1xf32>
      tpu.vector_store %arg19[%c0_18, %c0_19, %c0_20], %36 {strides = array<i32>} : memref<4x8x1xf32, #tpu.memory_space<vmem>>, vector<4x8x1xf32>,
      %cst_21 = arith.constant 0.000000e+00 : f32
      %38 = vector.broadcast %cst_21 : f32 to vector<4x8x1xf32>
      %c0_22 = arith.constant 0 : index
      %c0_23 = arith.constant 0 : index
      %c0_24 = arith.constant 0 : index
      %39 = vector.load %arg20[%c0_22, %c0_23, %c0_24] : memref<4x8x1xf32, #tpu.memory_space<vmem>>, vector<4x8x1xf32>
      tpu.vector_store %arg20[%c0_22, %c0_23, %c0_24], %38 {strides = array<i32>} : memref<4x8x1xf32, #tpu.memory_space<vmem>>, vector<4x8x1xf32>,
      %cst_25 = arith.constant 0.000000e+00 : f32
      %40 = vector.broadcast %cst_25 : f32 to vector<4x8x8xf32>
      %c0_26 = arith.constant 0 : index
      %c0_27 = arith.constant 0 : index
      %c0_28 = arith.constant 0 : index
      %41 = vector.load %arg21[%c0_26, %c0_27, %c0_28] : memref<4x8x8xf32, #tpu.memory_space<vmem>>, vector<4x8x8xf32>
      tpu.vector_store %arg21[%c0_26, %c0_27, %c0_28], %40 {strides = array<i32>} : memref<4x8x8xf32, #tpu.memory_space<vmem>>, vector<4x8x8xf32>,
    } else {
    }
    %c8_i32 = arith.constant 8 : i32
    %6 = arith.muli %arg2, %c8_i32 : i32
    %c8_i32_3 = arith.constant 8 : i32
    %7 = arith.muli %arg1, %c8_i32_3 : i32
    %c7_i32 = arith.constant 7 : i32
    %8 = arith.addi %7, %c7_i32 : i32
    %9 = arith.cmpi sle, %6, %8 : i32
    %10 = arith.extui %9 : i1 to i32
    %c0_i32_4 = arith.constant 0 : i32
    %11 = arith.cmpi ne, %10, %c0_i32_4 : i32
    scf.if %11 {
      %15 = arith.index_cast %arg2 : i32 to index
      %c0 = arith.constant 0 : index
      %c0_7 = arith.constant 0 : index
      %c0_8 = arith.constant 0 : index
      %16 = vector.load %arg22[%15, %c0, %c0_7, %c0_8] : memref<1x4x8x8xbf16, #tpu.memory_space<vmem>>, vector<1x4x8x8xbf16>
      %17 = vector.shape_cast %16 : vector<1x4x8x8xbf16> to vector<4x8x8xbf16>
      %18 = arith.index_cast %arg2 : i32 to index
      %c0_9 = arith.constant 0 : index
      %c0_10 = arith.constant 0 : index
      %c0_11 = arith.constant 0 : index
      %19 = vector.load %arg23[%18, %c0_9, %c0_10, %c0_11] : memref<1x4x8x8xbf16, #tpu.memory_space<vmem>>, vector<1x4x8x8xbf16>
      %20 = vector.shape_cast %19 : vector<1x4x8x8xbf16> to vector<4x8x8xbf16>
      %c0_12 = arith.constant 0 : index
      %c0_13 = arith.constant 0 : index
      %c0_14 = arith.constant 0 : index
      %21 = vector.load %arg18[%c0_12, %c0_13, %c0_14] : memref<4x8x8xbf16, #tpu.memory_space<vmem>>, vector<4x8x8xbf16>
      "tpu.trace_start"() <{level = 10 : i32, message = "hqd,hkd->hqk"}> : () -> ()
      %cst = arith.constant dense<0.000000e+00> : vector<4x8x8xf32>
      %22 = tpu.matmul %21, %17, %cst {dimension_numbers = #tpu.dot_dimension_numbers<[2], [2], [1], [1], [0, 0, 0, 1, 1, 1], [0], [0]>} : vector<4x8x8xbf16>, vector<4x8x8xbf16>, vector<4x8x8xf32> -> vector<4x8x8xf32>
      "tpu.trace_stop"() : () -> ()
      %c8_i32_15 = arith.constant 8 : i32
      %23 = arith.muli %arg1, %c8_i32_15 : i32
      %24 = tpu.iota {dimensions = array<i32: 1>} : vector<1x8x8xi32>
      %25 = vector.broadcast %23 : i32 to vector<1x8x8xi32>
      %26 = arith.addi %25, %24 : vector<1x8x8xi32>
      %c8_i32_16 = arith.constant 8 : i32
      %27 = arith.muli %arg2, %c8_i32_16 : i32
      %28 = tpu.iota {dimensions = array<i32: 2>} : vector<1x8x8xi32>
      %29 = vector.broadcast %27 : i32 to vector<1x8x8xi32>
      %30 = arith.addi %29, %28 : vector<1x8x8xi32>
      %31 = arith.cmpi sge, %26, %30 : vector<1x8x8xi32>
      %cst_17 = arith.constant -1.000000e+30 : f32
      %32 = vector.shape_cast %31 : vector<1x8x8xi1> to vector<1x8x8xi1>
      %33 = vector.broadcast %32 : vector<1x8x8xi1> to vector<4x8x8xi1>
      %34 = vector.broadcast %cst_17 : f32 to vector<4x8x8xf32>
      %35 = arith.select %33, %22, %34 : vector<4x8x8xi1>, vector<4x8x8xf32>
      %c0_18 = arith.constant 0 : index
      %c0_19 = arith.constant 0 : index
      %c0_20 = arith.constant 0 : index
      %36 = vector.load %arg19[%c0_18, %c0_19, %c0_20] : memref<4x8x1xf32, #tpu.memory_space<vmem>>, vector<4x8x1xf32>
      %cst_21 = arith.constant dense<0xFF800000> : vector<4x8xf32>
      %37 = vector.multi_reduction <maximumf>, %35, %cst_21 [2] : vector<4x8x8xf32> to vector<4x8xf32>
      %38 = vector.shape_cast %37 : vector<4x8xf32> to vector<4x8x1xf32>
      %39 = arith.maximumf %36, %38 : vector<4x8x1xf32>
      %40 = arith.subf %36, %39 : vector<4x8x1xf32>
      %41 = math.exp %40 : vector<4x8x1xf32>
      %42 = vector.broadcast %39 : vector<4x8x1xf32> to vector<4x8x8xf32>
      %43 = arith.subf %35, %42 : vector<4x8x8xf32>
      %44 = math.exp %43 : vector<4x8x8xf32>
      %c0_22 = arith.constant 0 : index
      %c0_23 = arith.constant 0 : index
      %c0_24 = arith.constant 0 : index
      %45 = vector.load %arg20[%c0_22, %c0_23, %c0_24] : memref<4x8x1xf32, #tpu.memory_space<vmem>>, vector<4x8x1xf32>
      %46 = arith.mulf %41, %45 : vector<4x8x1xf32>
      %cst_25 = arith.constant dense<0.000000e+00> : vector<4x8xf32>
      %47 = vector.multi_reduction <add>, %44, %cst_25 [2] : vector<4x8x8xf32> to vector<4x8xf32>
      %48 = vector.shape_cast %47 : vector<4x8xf32> to vector<4x8x1xf32>
      %49 = arith.addf %46, %48 : vector<4x8x1xf32>
      %c0_26 = arith.constant 0 : index
      %c0_27 = arith.constant 0 : index
      %c0_28 = arith.constant 0 : index
      %50 = vector.load %arg20[%c0_26, %c0_27, %c0_28] : memref<4x8x1xf32, #tpu.memory_space<vmem>>, vector<4x8x1xf32>
      tpu.vector_store %arg20[%c0_26, %c0_27, %c0_28], %49 {strides = array<i32>} : memref<4x8x1xf32, #tpu.memory_space<vmem>>, vector<4x8x1xf32>,
      %c0_29 = arith.constant 0 : index
      %c0_30 = arith.constant 0 : index
      %c0_31 = arith.constant 0 : index
      %51 = vector.load %arg21[%c0_29, %c0_30, %c0_31] : memref<4x8x8xf32, #tpu.memory_space<vmem>>, vector<4x8x8xf32>
      %52 = vector.broadcast %41 : vector<4x8x1xf32> to vector<4x8x8xf32>
      %53 = arith.mulf %52, %51 : vector<4x8x8xf32>
      %54 = arith.truncf %44 : vector<4x8x8xf32> to vector<4x8x8xbf16>
      "tpu.trace_start"() <{level = 10 : i32, message = "hqk,hkd->hqd"}> : () -> ()
      %cst_32 = arith.constant dense<0.000000e+00> : vector<4x8x8xf32>
      %55 = tpu.matmul %54, %20, %cst_32 {dimension_numbers = #tpu.dot_dimension_numbers<[2], [1], [1], [2], [0, 0, 0, 1, 1, 2], [0], [0]>} : vector<4x8x8xbf16>, vector<4x8x8xbf16>, vector<4x8x8xf32> -> vector<4x8x8xf32>
      "tpu.trace_stop"() : () -> ()
      %56 = arith.addf %53, %55 : vector<4x8x8xf32>
      %c0_33 = arith.constant 0 : index
      %c0_34 = arith.constant 0 : index
      %c0_35 = arith.constant 0 : index
      %57 = vector.load %arg21[%c0_33, %c0_34, %c0_35] : memref<4x8x8xf32, #tpu.memory_space<vmem>>, vector<4x8x8xf32>
      tpu.vector_store %arg21[%c0_33, %c0_34, %c0_35], %56 {strides = array<i32>} : memref<4x8x8xf32, #tpu.memory_space<vmem>>, vector<4x8x8xf32>,
      %c0_36 = arith.constant 0 : index
      %c0_37 = arith.constant 0 : index
      %c0_38 = arith.constant 0 : index
      %58 = vector.load %arg19[%c0_36, %c0_37, %c0_38] : memref<4x8x1xf32, #tpu.memory_space<vmem>>, vector<4x8x1xf32>
      tpu.vector_store %arg19[%c0_36, %c0_37, %c0_38], %39 {strides = array<i32>} : memref<4x8x1xf32, #tpu.memory_space<vmem>>, vector<4x8x1xf32>,
    } else {
    }
    %c0_i32_5 = arith.constant 0 : i32
    %12 = arith.cmpi eq, %arg2, %c0_i32_5 : i32
    %13 = arith.extui %12 : i1 to i32
    %c0_i32_6 = arith.constant 0 : i32
    %14 = arith.cmpi ne, %13, %c0_i32_6 : i32
    scf.if %14 {
      %c0 = arith.constant 0 : index
      %c0_7 = arith.constant 0 : index
      %c0_8 = arith.constant 0 : index
      %15 = vector.load %arg21[%c0, %c0_7, %c0_8] : memref<4x8x8xf32, #tpu.memory_space<vmem>>, vector<4x8x8xf32>
      %c0_9 = arith.constant 0 : index
      %c0_10 = arith.constant 0 : index
      %c0_11 = arith.constant 0 : index
      %16 = vector.load %arg20[%c0_9, %c0_10, %c0_11] : memref<4x8x1xf32, #tpu.memory_space<vmem>>, vector<4x8x1xf32>
      %17 = tpu.reciprocal %16 {approx = true} : vector<4x8x1xf32> -> vector<4x8x1xf32>
      %18 = vector.broadcast %17 : vector<4x8x1xf32> to vector<4x8x8xf32>
      %19 = arith.mulf %15, %18 : vector<4x8x8xf32>
      %20 = vector.extract_strided_slice %19 {offsets = [0, 0, 0], sizes = [1, 8, 8], strides = [1, 1, 1]} : vector<4x8x8xf32> to vector<1x8x8xf32>
      %21 = vector.shape_cast %20 : vector<1x8x8xf32> to vector<8x8xf32>
      %22 = vector.extract_strided_slice %19 {offsets = [1, 0, 0], sizes = [1, 8, 8], strides = [1, 1, 1]} : vector<4x8x8xf32> to vector<1x8x8xf32>
      %23 = vector.shape_cast %22 : vector<1x8x8xf32> to vector<8x8xf32>
      %24 = vector.extract_strided_slice %19 {offsets = [2, 0, 0], sizes = [1, 8, 8], strides = [1, 1, 1]} : vector<4x8x8xf32> to vector<1x8x8xf32>
      %25 = vector.shape_cast %24 : vector<1x8x8xf32> to vector<8x8xf32>
      %26 = vector.extract_strided_slice %19 {offsets = [3, 0, 0], sizes = [1, 8, 8], strides = [1, 1, 1]} : vector<4x8x8xf32> to vector<1x8x8xf32>
      %27 = vector.shape_cast %26 : vector<1x8x8xf32> to vector<8x8xf32>
      %28 = tpu.concatenate %21, %23, %25, %27 in 1 : vector<8x8xf32>, vector<8x8xf32>, vector<8x8xf32>, vector<8x8xf32> -> vector<8x32xf32>
      %29 = arith.truncf %28 : vector<8x32xf32> to vector<8x32xbf16>
      %c0_12 = arith.constant 0 : index
      %c0_13 = arith.constant 0 : index
      %30 = vector.load %arg7[%c0_12, %c0_13] : memref<32x32xbf16, #tpu.memory_space<vmem>>, vector<32x32xbf16>
      %cst = arith.constant dense<0.000000e+00> : vector<8x32xf32>
      %31 = tpu.matmul %29, %30, %cst {dimension_numbers = #tpu.dot_dimension_numbers<[1], [0], [0], [1], [0, 0, 1, 1], [], []>} : vector<8x32xbf16>, vector<32x32xbf16>, vector<8x32xf32> -> vector<8x32xf32>
      %c0_14 = arith.constant 0 : index
      %c0_15 = arith.constant 0 : index
      %32 = vector.load %arg8[%c0_14, %c0_15] : memref<1x32xbf16, #tpu.memory_space<vmem>>, vector<1x32xbf16>
      %33 = arith.extf %32 : vector<1x32xbf16> to vector<1x32xf32>
      %34 = vector.broadcast %33 : vector<1x32xf32> to vector<8x32xf32>
      %35 = arith.addf %31, %34 : vector<8x32xf32>
      %c0_16 = arith.constant 0 : index
      %c0_17 = arith.constant 0 : index
      %c0_18 = arith.constant 0 : index
      %36 = vector.load %arg3[%c0_16, %c0_17, %c0_18] : memref<1x8x32xbf16, #tpu.memory_space<vmem>>, vector<1x8x32xbf16>
      %37 = vector.shape_cast %36 : vector<1x8x32xbf16> to vector<8x32xbf16>
      %38 = arith.extf %37 : vector<8x32xbf16> to vector<8x32xf32>
      %39 = arith.addf %38, %35 : vector<8x32xf32>
      %cst_19 = arith.constant dense<0.000000e+00> : vector<8xf32>
      %40 = vector.multi_reduction <add>, %39, %cst_19 [1] : vector<8x32xf32> to vector<8xf32>
      %41 = vector.shape_cast %40 : vector<8xf32> to vector<8x1xf32>
      %cst_20 = arith.constant 3.200000e+01 : f32
      %42 = vector.broadcast %cst_20 : f32 to vector<8x1xf32>
      %43 = arith.divf %41, %42 : vector<8x1xf32>
      %44 = vector.broadcast %43 : vector<8x1xf32> to vector<8x32xf32>
      %45 = arith.subf %39, %44 : vector<8x32xf32>
      %46 = arith.mulf %45, %45 : vector<8x32xf32>
      %cst_21 = arith.constant dense<0.000000e+00> : vector<8xf32>
      %47 = vector.multi_reduction <add>, %46, %cst_21 [1] : vector<8x32xf32> to vector<8xf32>
      %48 = vector.shape_cast %47 : vector<8xf32> to vector<8x1xf32>
      %cst_22 = arith.constant 3.200000e+01 : f32
      %49 = vector.broadcast %cst_22 : f32 to vector<8x1xf32>
      %50 = arith.divf %48, %49 : vector<8x1xf32>
      %51 = vector.broadcast %43 : vector<8x1xf32> to vector<8x32xf32>
      %52 = arith.subf %39, %51 : vector<8x32xf32>
      %cst_23 = arith.constant 9.99999974E-6 : f32
      %53 = vector.broadcast %cst_23 : f32 to vector<8x1xf32>
      %54 = arith.addf %50, %53 : vector<8x1xf32>
      %55 = math.rsqrt %54 : vector<8x1xf32>
      %56 = vector.broadcast %55 : vector<8x1xf32> to vector<8x32xf32>
      %57 = arith.mulf %52, %56 : vector<8x32xf32>
      %c0_24 = arith.constant 0 : index
      %c0_25 = arith.constant 0 : index
      %58 = vector.load %arg9[%c0_24, %c0_25] : memref<1x32xbf16, #tpu.memory_space<vmem>>, vector<1x32xbf16>
      %59 = arith.extf %58 : vector<1x32xbf16> to vector<1x32xf32>
      %60 = vector.broadcast %59 : vector<1x32xf32> to vector<8x32xf32>
      %61 = arith.mulf %57, %60 : vector<8x32xf32>
      %c0_26 = arith.constant 0 : index
      %c0_27 = arith.constant 0 : index
      %62 = vector.load %arg10[%c0_26, %c0_27] : memref<1x32xbf16, #tpu.memory_space<vmem>>, vector<1x32xbf16>
      %63 = arith.extf %62 : vector<1x32xbf16> to vector<1x32xf32>
      %64 = vector.broadcast %63 : vector<1x32xf32> to vector<8x32xf32>
      %65 = arith.addf %61, %64 : vector<8x32xf32>
      %66 = arith.truncf %65 : vector<8x32xf32> to vector<8x32xbf16>
      %cst_28 = arith.constant 0.000000e+00 : f32
      %67 = vector.broadcast %cst_28 : f32 to vector<8x32xf32>
      %c0_29 = arith.constant 0 : index
      %c0_30 = arith.constant 0 : index
      %68 = vector.load %arg11[%c0_29, %c0_30] : memref<32x128xbf16, #tpu.memory_space<vmem>>, vector<32x128xbf16>
      %cst_31 = arith.constant dense<0.000000e+00> : vector<8x128xf32>
      %69 = tpu.matmul %66, %68, %cst_31 {dimension_numbers = #tpu.dot_dimension_numbers<[1], [0], [0], [1], [0, 0, 1, 1], [], []>} : vector<8x32xbf16>, vector<32x128xbf16>, vector<8x128xf32> -> vector<8x128xf32>
      %c0_32 = arith.constant 0 : index
      %c0_33 = arith.constant 0 : index
      %70 = vector.load %arg12[%c0_32, %c0_33] : memref<1x128xbf16, #tpu.memory_space<vmem>>, vector<1x128xbf16>
      %71 = arith.extf %70 : vector<1x128xbf16> to vector<1x128xf32>
      %72 = vector.broadcast %71 : vector<1x128xf32> to vector<8x128xf32>
      %73 = arith.addf %69, %72 : vector<8x128xf32>
      %cst_34 = arith.constant 0.000000e+00 : f32
      %74 = vector.broadcast %cst_34 : f32 to vector<8x128xf32>
      %75 = arith.maximumf %73, %74 : vector<8x128xf32>
      %76 = arith.truncf %75 : vector<8x128xf32> to vector<8x128xbf16>
      %c0_35 = arith.constant 0 : index
      %c0_36 = arith.constant 0 : index
      %77 = vector.load %arg13[%c0_35, %c0_36] : memref<128x32xbf16, #tpu.memory_space<vmem>>, vector<128x32xbf16>
      %cst_37 = arith.constant dense<0.000000e+00> : vector<8x32xf32>
      %78 = tpu.matmul %76, %77, %cst_37 {dimension_numbers = #tpu.dot_dimension_numbers<[1], [0], [0], [1], [0, 0, 1, 1], [], []>} : vector<8x128xbf16>, vector<128x32xbf16>, vector<8x32xf32> -> vector<8x32xf32>
      %79 = arith.addf %67, %78 : vector<8x32xf32>
      %c0_38 = arith.constant 0 : index
      %c0_39 = arith.constant 0 : index
      %80 = vector.load %arg14[%c0_38, %c0_39] : memref<1x32xbf16, #tpu.memory_space<vmem>>, vector<1x32xbf16>
      %81 = arith.extf %80 : vector<1x32xbf16> to vector<1x32xf32>
      %82 = vector.broadcast %81 : vector<1x32xf32> to vector<8x32xf32>
      %83 = arith.addf %79, %82 : vector<8x32xf32>
      %84 = arith.addf %65, %83 : vector<8x32xf32>
      %cst_40 = arith.constant dense<0.000000e+00> : vector<8xf32>
      %85 = vector.multi_reduction <add>, %84, %cst_40 [1] : vector<8x32xf32> to vector<8xf32>
      %86 = vector.shape_cast %85 : vector<8xf32> to vector<8x1xf32>
      %cst_41 = arith.constant 3.200000e+01 : f32
      %87 = vector.broadcast %cst_41 : f32 to vector<8x1xf32>
      %88 = arith.divf %86, %87 : vector<8x1xf32>
      %89 = vector.broadcast %88 : vector<8x1xf32> to vector<8x32xf32>
      %90 = arith.subf %84, %89 : vector<8x32xf32>
      %91 = arith.mulf %90, %90 : vector<8x32xf32>
      %cst_42 = arith.constant dense<0.000000e+00> : vector<8xf32>
      %92 = vector.multi_reduction <add>, %91, %cst_42 [1] : vector<8x32xf32> to vector<8xf32>
      %93 = vector.shape_cast %92 : vector<8xf32> to vector<8x1xf32>
      %cst_43 = arith.constant 3.200000e+01 : f32
      %94 = vector.broadcast %cst_43 : f32 to vector<8x1xf32>
      %95 = arith.divf %93, %94 : vector<8x1xf32>
      %96 = vector.broadcast %88 : vector<8x1xf32> to vector<8x32xf32>
      %97 = arith.subf %84, %96 : vector<8x32xf32>
      %cst_44 = arith.constant 9.99999974E-6 : f32
      %98 = vector.broadcast %cst_44 : f32 to vector<8x1xf32>
      %99 = arith.addf %95, %98 : vector<8x1xf32>
      %100 = math.rsqrt %99 : vector<8x1xf32>
      %101 = vector.broadcast %100 : vector<8x1xf32> to vector<8x32xf32>
      %102 = arith.mulf %97, %101 : vector<8x32xf32>
      %c0_45 = arith.constant 0 : index
      %c0_46 = arith.constant 0 : index
      %103 = vector.load %arg15[%c0_45, %c0_46] : memref<1x32xbf16, #tpu.memory_space<vmem>>, vector<1x32xbf16>
      %104 = arith.extf %103 : vector<1x32xbf16> to vector<1x32xf32>
      %105 = vector.broadcast %104 : vector<1x32xf32> to vector<8x32xf32>
      %106 = arith.mulf %102, %105 : vector<8x32xf32>
      %c0_47 = arith.constant 0 : index
      %c0_48 = arith.constant 0 : index
      %107 = vector.load %arg16[%c0_47, %c0_48] : memref<1x32xbf16, #tpu.memory_space<vmem>>, vector<1x32xbf16>
      %108 = arith.extf %107 : vector<1x32xbf16> to vector<1x32xf32>
      %109 = vector.broadcast %108 : vector<1x32xf32> to vector<8x32xf32>
      %110 = arith.addf %106, %109 : vector<8x32xf32>
      %111 = arith.truncf %110 : vector<8x32xf32> to vector<8x32xbf16>
      %c0_49 = arith.constant 0 : index
      %c0_50 = arith.constant 0 : index
      %c0_51 = arith.constant 0 : index
      %112 = vector.load %arg17[%c0_49, %c0_50, %c0_51] : memref<1x8x32xbf16, #tpu.memory_space<vmem>>, vector<1x8x32xbf16>
      %113 = vector.shape_cast %112 : vector<1x8x32xbf16> to vector<8x32xbf16>
      %114 = vector.shape_cast %111 : vector<8x32xbf16> to vector<1x8x32xbf16>
      tpu.vector_store %arg17[%c0_49, %c0_50, %c0_51], %114 {strides = array<i32>} : memref<1x8x32xbf16, #tpu.memory_space<vmem>>, vector<1x8x32xbf16>,
    } else {
    }
    return
  }
  func.func @transform_0(%arg0: i32, %arg1: i32, %arg2: i32) -> (i32, i32, i32) {
    %c0_i32 = arith.constant 0 : i32
    %c0_i32_0 = arith.constant 0 : i32
    return %arg0, %arg1, %c0_i32 : i32, i32, i32
  }
  func.func @transform_1(%arg0: i32, %arg1: i32, %arg2: i32) -> (i32, i32, i32) {
    %c0_i32 = arith.constant 0 : i32
    %c0_i32_0 = arith.constant 0 : i32
    return %arg0, %arg2, %c0_i32 : i32, i32, i32
  }
  func.func @transform_2(%arg0: i32, %arg1: i32, %arg2: i32) -> (i32, i32) {
    %c0_i32 = arith.constant 0 : i32
    %c0_i32_0 = arith.constant 0 : i32
    %c0_i32_1 = arith.constant 0 : i32
    return %c0_i32, %c0_i32_0 : i32, i32
  }
  func.func @transform_3(%arg0: i32, %arg1: i32, %arg2: i32) -> (i32, i32) {
    %c0_i32 = arith.constant 0 : i32
    %c0_i32_0 = arith.constant 0 : i32
    %c0_i32_1 = arith.constant 0 : i32
    return %c0_i32, %c0_i32_0 : i32, i32
  }
  func.func @transform_4(%arg0: i32, %arg1: i32, %arg2: i32) -> (i32, i32) {
    %c0_i32 = arith.constant 0 : i32
    %c0_i32_0 = arith.constant 0 : i32
    %c0_i32_1 = arith.constant 0 : i32
    return %c0_i32, %c0_i32_0 : i32, i32
  }
  func.func @transform_5(%arg0: i32, %arg1: i32, %arg2: i32) -> (i32, i32) {
    %c0_i32 = arith.constant 0 : i32
    %c0_i32_0 = arith.constant 0 : i32
    %c0_i32_1 = arith.constant 0 : i32
    return %c0_i32, %c0_i32_0 : i32, i32
  }
  func.func @transform_6(%arg0: i32, %arg1: i32, %arg2: i32) -> (i32, i32) {
    %c0_i32 = arith.constant 0 : i32
    %c0_i32_0 = arith.constant 0 : i32
    %c0_i32_1 = arith.constant 0 : i32
    return %c0_i32, %c0_i32_0 : i32, i32
  }
  func.func @transform_7(%arg0: i32, %arg1: i32, %arg2: i32) -> (i32, i32) {
    %c0_i32 = arith.constant 0 : i32
    %c0_i32_0 = arith.constant 0 : i32
    %c0_i32_1 = arith.constant 0 : i32
    return %c0_i32, %c0_i32_0 : i32, i32
  }
  func.func @transform_8(%arg0: i32, %arg1: i32, %arg2: i32) -> (i32, i32) {
    %c0_i32 = arith.constant 0 : i32
    %c0_i32_0 = arith.constant 0 : i32
    %c0_i32_1 = arith.constant 0 : i32
    return %c0_i32, %c0_i32_0 : i32, i32
  }
  func.func @transform_9(%arg0: i32, %arg1: i32, %arg2: i32) -> (i32, i32) {
    %c0_i32 = arith.constant 0 : i32
    %c0_i32_0 = arith.constant 0 : i32
    %c0_i32_1 = arith.constant 0 : i32
    return %c0_i32, %c0_i32_0 : i32, i32
  }
  func.func @transform_10(%arg0: i32, %arg1: i32, %arg2: i32) -> (i32, i32) {
    %c0_i32 = arith.constant 0 : i32
    %c0_i32_0 = arith.constant 0 : i32
    %c0_i32_1 = arith.constant 0 : i32
    return %c0_i32, %c0_i32_0 : i32, i32
  }
  func.func @transform_11(%arg0: i32, %arg1: i32, %arg2: i32) -> (i32, i32) {
    %c0_i32 = arith.constant 0 : i32
    %c0_i32_0 = arith.constant 0 : i32
    %c0_i32_1 = arith.constant 0 : i32
    return %c0_i32, %c0_i32_0 : i32, i32
  }
  func.func @transform_12(%arg0: i32, %arg1: i32, %arg2: i32) -> (i32, i32) {
    %c0_i32 = arith.constant 0 : i32
    %c0_i32_0 = arith.constant 0 : i32
    %c0_i32_1 = arith.constant 0 : i32
    return %c0_i32, %c0_i32_0 : i32, i32
  }
  func.func @transform_13(%arg0: i32, %arg1: i32, %arg2: i32) -> (i32, i32) {
    %c0_i32 = arith.constant 0 : i32
    %c0_i32_0 = arith.constant 0 : i32
    %c0_i32_1 = arith.constant 0 : i32
    return %c0_i32, %c0_i32_0 : i32, i32
  }
  func.func @transform_14(%arg0: i32, %arg1: i32, %arg2: i32) -> (i32, i32, i32) {
    %c0_i32 = arith.constant 0 : i32
    %c0_i32_0 = arith.constant 0 : i32
    return %arg0, %arg1, %c0_i32 : i32, i32, i32
  }
}

</mosaic_0001>

<bundles_post_ra>
// kernel: gpt_decoder_forward.2
= control target key start
LH: loop header
LB: loop body
LE: loop exit
PB: predicated region body
PF: predicated region fallthrough
CT: control target
= control target key end

     0   :  { %s2150_s29 = smov 0   ;;  %s2152_s30 = smov 0   ;;  %s2473_s0 = inlined_call_operand.vmem [shape: bf16[2,8,32], index: 0, kind: input, shape index: {}, may-alias: {0,1}]   ;;  %s2474_s1 = inlined_call_operand.vmem [shape: bf16[2,8,32], index: 1, kind: input, shape index: {}, may-alias: {0,1}]   ;;  %s2475_s2 = inlined_call_operand.vmem [shape: bf16[32,96], index: 2, kind: input, shape index: {}]   ;;  %s2476_s3 = inlined_call_operand.vmem [shape: bf16[1,96], index: 3, kind: input, shape index: {}]   ;;  %s2477_s4 = inlined_call_operand.vmem [shape: bf16[32,32], index: 4, kind: input, shape index: {}]   ;;  %s2478_s5 = inlined_call_operand.vmem [shape: bf16[1,32], index: 5, kind: input, shape index: {}]   ;;  %s2479_s6 = inlined_call_operand.vmem [shape: bf16[1,32], index: 6, kind: input, shape index: {}]   ;;  %s2480_s7 = inlined_call_operand.vmem [shape: bf16[1,32], index: 7, kind: input, shape index: {}]   ;;  %s2481_s8 = inlined_call_operand.vmem [shape: bf16[32,128], index: 8, kind: input, shape index: {}]   ;;  %s2482_s9 = inlined_call_operand.vmem [shape: bf16[1,128], index: 9, kind: input, shape index: {}]   ;;  %s2483_s10 = inlined_call_operand.vmem [shape: bf16[128,32], index: 10, kind: input, shape index: {}]   ;;  %s2484_s11 = inlined_call_operand.vmem [shape: bf16[1,32], index: 11, kind: input, shape index: {}]   ;;  %s2485_s12 = inlined_call_operand.vmem [shape: bf16[1,32], index: 12, kind: input, shape index: {}]   ;;  %s2486_s13 = inlined_call_operand.vmem [shape: bf16[1,32], index: 13, kind: input, shape index: {}]   ;;  %s2487_s14 = inlined_call_operand.vmem [shape: bf16[2,8,32], index: 14, kind: output, shape index: {}]  }
   0x1   :  { %s2154_s15 = smov 0  }
   0x2 LB: > { %s43_s16 = sadd.s32 1, %s2058_s30  ;;  %p1780_p0 = scmp.ge.s32.totalorder %s2062_s15, 1  ;;  %s2062_s15 = sphi %s2154_s15, %s24_s15   ;;  %s2058_s30 = sphi %s2152_s30, %s2489_s30   ;;  %s2054_s29 = sphi %s2150_s29, %s2488_s29  }
   0x3   : > { %p45_p1 = scmp.ge.s32.totalorder %s43_s16, 2  ;;  %p451_p2 = scmp.lt.s32.totalorder %s2062_s15, 3 }
   0x5   : > { %s2491_s16 = smov (%p45_p1, %s43_s16), 0  ;;  %p452_p3 = pnand %p1780_p0, %p451_p2 }
   0x6   : > { %s2064_s19 = smov (!%p452_p3), 96   ;;  %p508_p4 = scmp.lt.s32.totalorder (!%p452_p3), %s2054_s29, 1 }
   0x7   : > { %455 = sbr.rel (%p452_p3) target bundleno = 2571 (0xa0b), region = 76  ;;  %s2067_s26 = smov (!%p452_p3), 120  }
   0x8   : > { %s2069_s28 = smov (!%p452_p3), 104   ;;  %s2072_s20 = smov (!%p452_p3), 8  }
   0x9   : > { %s2073_s21 = smov (!%p452_p3), 16   ;;  %s2074_s23 = smov (!%p452_p3), 24  }
   0xc   : > { %v1996_v0 = vld [vmem:[%s2475_s2 + $0x8] sm:$0xff]   ;;  %v1997_v1 = vld [vmem:[%s2475_s2] sm:$0xff]   ;;  %v2065_v2 = vmov 0.0   ;;  %vm2066_vm0 = vmmov 0   ;;  %v541_v4 = vlaneseq  ;;  %s2493_s29 = smov (!%p508_p4, %s2054_s29), 1  ;;  %vm565_vm1 = vcmask 261120  }
   0xd   : > { %557 = vrot.lane.b32.xlu0 %v1996_v0, %s2064_s19  ;;  %1859 = vmatprep.subr.bf16.mxu1 %v2065_v2  ;;  %v539_v3 = vld [vmem:[%s2476_s3] sm:$0x1]  ;;  %s2193_s24 = sshll.u32 %s2493_s29, 2  ;;  %v1998_v12 = vld [vmem:[%s2475_s2 + $0x8] sm:$0xff]   ;;  %vm761_vm2 = vcmask 64512   ;;  %vm626_vm3 = vcmask 60416  }
   0xe   : > { %1863 = vmatprep.mubr.msk.bf16.mxu1 %vm2066_vm0, %v2065_v2  ;;  %1887 = vmatprep.subr.bf16.mxu0 %v2065_v2  ;;  %v540_v5 = vunpack.c.l.bf16 %v539_v3  ;;  %v2186_v6 = vshrl.u32 %v541_v4, 7  ;;  %s521_s27 = scalar_lea.vmem %s2474_s1, %s2193_s24  ;;  %v1999_v13 = vld [vmem:[%s2475_s2] sm:$0xff]   ;;  %s2215_s22 = scalar_lea.vmem %s2473_s0, %s2193_s24  ;;  %762 = vst.msk [vmem:[#allocation5] sm:$0xff] %vm761_vm2, %v2065_v2  ;;  %763 = vst.msk [vmem:[#allocation5 + $0x8] sm:$0xff] %vm761_vm2, %v2065_v2  ;;  %v980_v56 = vand.u32 127, %v541_v4  ;;  %vm752_vm5 = vcmask 7168  }
   0xf   : > { %1889 = vmatprep.mubr.msk.bf16.mxu0 %vm2066_vm0, %v2065_v2  ;;  %v534_v11 = vld [vmem:[%s521_s27] sm:$0xf]  ;;  %764 = vst.msk [vmem:[#allocation5 + $0x10] sm:$0xff] %vm761_vm2, %v2065_v2  ;;  %765 = vst.msk [vmem:[#allocation5 + $0x18] sm:$0xff] %vm761_vm2, %v2065_v2  ;;  %s2068_s27 = smov 112   ;;  %v2070_v61 = vmov -inf   ;;  %s528_s25 = scalar_lea.vmem %s2487_s14, %s2193_s24 }
  0x10   : > { %v2189_v7 = vsub.s32 0, %v2186_v6  ;;  %v665_v14 = vld [vmem:[%s2215_s22] sm:$0xf]  ;;  %vm983_vm4 = vcmp.ge.s32.totalorder %v2186_v6, %v980_v56  ;;  %753 = vst.msk [vmem:[#allocation3] sm:$0xff] %vm752_vm5, %v2070_v61  ;;  %754 = vst.msk [vmem:[#allocation3 + $0x8] sm:$0xff] %vm752_vm5, %v2070_v61  ;;  %v2071_v0 = vmov 0  }
  0x11   : > { %555 = vrot.lane.b32.xlu0 %v1997_v1, %s2064_s19  ;;  %v670_v16 = vld [vmem:[%s2476_s3] sm:$0x1]  ;;  %755 = vst.msk [vmem:[#allocation3 + $0x10] sm:$0xff] %vm752_vm5, %v2070_v61  ;;  %756 = vst.msk [vmem:[#allocation3 + $0x18] sm:$0xff] %vm752_vm5, %v2070_v61  ;;  %1995 = vset.pattern.permute.xlu1 %v2071_v0  ;;  %vm1118_vm6 = vcmask 1043456   ;;  %vm1365_vm7 = vcmask 130048  }
  0x12   : > { %v544_v8 = vrot.slane %v540_v5, %v2189_v7  ;;  %v671_v19 = vunpack.c.l.bf16 %v670_v16  ;;  %757 = vst.msk [vmem:[#allocation4] sm:$0xff] %vm752_vm5, %v2065_v2  ;;  %758 = vst.msk [vmem:[#allocation4 + $0x8] sm:$0xff] %vm752_vm5, %v2065_v2  ;;  %1994 = vset.pattern.permute.xlu0 %v2071_v0  ;;  %vm1367_vm8 = vcmask 195584   ;;  %vm1674_vm9 = vcmask 257024  }
  0x13   : > { %759 = vst.msk [vmem:[#allocation4 + $0x10] sm:$0xff] %vm752_vm5, %v2065_v2  ;;  %760 = vst.msk [vmem:[#allocation4 + $0x18] sm:$0xff] %vm752_vm5, %v2065_v2 }
  0x14   : > { %562 = vrot.lane.b32.xlu1 %v544_v8, %s2064_s19  ;;  %v675_v23 = vrot.slane %v671_v19, %v2189_v7 }
  0x17   : > { %v2313_v6 = vld [vmem:[#allocation3 + $0x8] sm:$0xff] }
  0x7f   : > { %v558_v9 = vpop.permute.xlu0 %557 }
  0x80   : > { %1860 = vmatpush3.bf16.msra.mxu1 %v558_v9 }
  0x81   : > { %1861 = vmatprep.subr.bf16.mxu1 %v2065_v2 }
  0x83   : > { %v556_v10 = vpop.permute.xlu0 %555 }
  0x84   : > { %1862 = vmatpush3.bf16.msra.mxu1 %v556_v10 }
  0x85   : > { %1867 = vmatprep.subr.bf16.mxu1 %v2065_v2 }
  0x86   : > { %v563_v15 = vpop.permute.xlu1 %562 }
  0x87   : > { %1864 = vmatmul.mubr.msk.bf16.vlgmr.msra.gmra.mxu1 %vm565_vm1, %v534_v11 }
  0x88   : > { %1868 = vmatpush3.bf16.msra.mxu1 %v1998_v12  ;;  %1871 = vmatprep.mubr.msk.bf16.mxu1 %vm2066_vm0, %v2065_v2 }
  0x89   : > { %1869 = vmatprep.subr.bf16.mxu1 %v2065_v2 }
  0x8c   : > { %1870 = vmatpush3.bf16.msra.mxu1 %v1999_v13 }
  0x8d   : > { %1875 = vmatprep.subr.bf16.mxu1 %v2065_v2 }
  0x8f   : > { %1872 = vmatmul.mubr.msk.bf16.vlgmr.msra.gmra.mxu1 %vm565_vm1, %v665_v14 }
  0x90   : > { %1877 = vmatprep.mubr.msk.bf16.mxu1 %vm2066_vm0, %v2065_v2 }
 0x147   : > { %v603_v17 = vpop.f32.mrf.mxu1 }
 0x148   : > { %v604_v18 = vadd.f32 %v603_v17, %v563_v15 }
 0x149   : > { %v1865_v20 = vpop.f32.mrf.mxu1 }
 0x14a   : > { %v2233_v21 = vpack.c.bf16 %v604_v18, %v604_v18  ;;  %610 = vrot.lane.b32.xlu1 %v604_v18, %s2067_s26  ;;  %613 = vrot.lane.b32.xlu0 %v604_v18, %s2068_s27 }
 0x14b   : > { %v606_v22 = vpop.f32.mrf.mxu1 }
 0x14c   : > { %627 = vst.msk [vmem:[#allocation6] sm:$0xf] %vm626_vm3, %v2233_v21 }
 0x14d   : > { %v1866_v24 = vpop.f32.mrf.mxu1 }
 0x14e   : > { %616 = vrot.lane.b32.xlu1 %v604_v18, %s2069_s28 }
 0x14f   : > { %v726_v25 = vpop.f32.mrf.mxu1 }
 0x150   : > { %v727_v26 = vadd.f32 %v726_v25, %v675_v23  ;;  %v2303_v23 = vld [vmem:[#allocation3] sm:$0xff] }
 0x151   : > { %v1873_v27 = vpop.f32.mrf.mxu1 }
 0x152   : > { %v732_v28 = vmul.f32 0.35355338, %v727_v26 }
 0x153   : > { %v729_v29 = vpop.f32.mrf.mxu1  ;;  %v776_v30 = vld [vmem:[#allocation6] sm:$0xf] }
 0x154   : > { %v743_v31 = vpack.c.bf16 %v732_v28, %v732_v28  ;;  %737 = vrot.lane.b32.xlu1 %v732_v28, %s2068_s27  ;;  %734 = vrot.lane.b32.xlu0 %v732_v28, %s2067_s26  ;;  %v795_v32 = vsel %vm761_vm2, %v776_v30, 0  ;;  %v992_v29 = vld [vmem:[#allocation3 + $0x10] sm:$0xff] }
 0x155   : > { %v1874_v33 = vpop.f32.mrf.mxu1  ;;  %1876 = vmatpush3.bf16.xpose.msra.mxu1 %v795_v32 }
 0x156   : > { %748 = vst.msk [vmem:[#allocation2] sm:$0xf] %vm626_vm3, %v743_v31  ;;  %1881 = vmatprep.subr.bf16.mxu1 %v2065_v2  ;;  %v993_v33 = vld [vmem:[#allocation3 + $0x18] sm:$0xff] }
 0x158   : > { %740 = vrot.lane.b32.xlu0 %v732_v28, %s2069_s28 }
 0x15d   : > { %v786_v34 = vld [vmem:[#allocation2] sm:$0xf] }
 0x15e   : > { %1878 = vmatmul.mubr.msk.bf16.vlgmr.msra.gmra.mxu1 %vm761_vm2, %v786_v34 }
 0x15f   : > { %1883 = vmatprep.mubr.msk.bf16.mxu1 %vm2066_vm0, %v2065_v2 }
 0x1bc   : > { %v611_v35 = vpop.permute.xlu1 %610  ;;  %v614_v36 = vpop.permute.xlu0 %613 }
 0x1bd   : > { %v2244_v37 = vpack.c.bf16 %v611_v35, %v611_v35  ;;  %v2246_v38 = vpack.c.bf16 %v614_v36, %v614_v36 }
 0x1bf   : > { %628 = vst.msk [vmem:[#allocation6 + $0x4] sm:$0xf] %vm626_vm3, %v2244_v37  ;;  %629 = vst.msk [vmem:[#allocation6 + $0x8] sm:$0xf] %vm626_vm3, %v2246_v38 }
 0x1c0   : > { %v617_v39 = vpop.permute.xlu1 %616 }
 0x1c1   : > { %v2252_v40 = vpack.c.bf16 %v617_v39, %v617_v39 }
 0x1c3   : > { %630 = vst.msk [vmem:[#allocation6 + $0xc] sm:$0xf] %vm626_vm3, %v2252_v40 }
 0x1c6   : > { %v738_v41 = vpop.permute.xlu1 %737  ;;  %v735_v42 = vpop.permute.xlu0 %734  ;;  %v777_v43 = vld [vmem:[#allocation6 + $0x4] sm:$0xf]  ;;  %v778_v44 = vld [vmem:[#allocation6 + $0x8] sm:$0xf] }
 0x1c7   : > { %v745_v45 = vpack.c.bf16 %v738_v41, %v738_v41  ;;  %v744_v46 = vpack.c.bf16 %v735_v42, %v735_v42  ;;  %v841_v47 = vsel %vm761_vm2, %v777_v43, 0  ;;  %v887_v48 = vsel %vm761_vm2, %v778_v44, 0 }
 0x1c8   : > { %1882 = vmatpush3.bf16.xpose.msra.mxu1 %v841_v47  ;;  %1888 = vmatpush3.bf16.xpose.msra.mxu0 %v887_v48 }
 0x1c9   : > { %750 = vst.msk [vmem:[#allocation2 + $0x8] sm:$0xf] %vm626_vm3, %v745_v45  ;;  %749 = vst.msk [vmem:[#allocation2 + $0x4] sm:$0xf] %vm626_vm3, %v744_v46  ;;  %1893 = vmatprep.subr.bf16.mxu1 %v2065_v2  ;;  %1899 = vmatprep.subr.bf16.mxu0 %v2065_v2 }
 0x1ca   : > { %v741_v49 = vpop.permute.xlu0 %740  ;;  %v779_v51 = vld [vmem:[#allocation6 + $0xc] sm:$0xf] }
 0x1cb   : > { %v746_v50 = vpack.c.bf16 %v741_v49, %v741_v49  ;;  %v933_v54 = vsel %vm761_vm2, %v779_v51, 0 }
 0x1cd   : > { %751 = vst.msk [vmem:[#allocation2 + $0xc] sm:$0xf] %vm626_vm3, %v746_v50 }
 0x1d0   : > { %v787_v52 = vld [vmem:[#allocation2 + $0x4] sm:$0xf]  ;;  %v788_v53 = vld [vmem:[#allocation2 + $0x8] sm:$0xf] }
 0x1d1   : > { %1884 = vmatmul.mubr.msk.bf16.vlgmr.msra.gmra.mxu1 %vm761_vm2, %v787_v52  ;;  %1890 = vmatmul.mubr.msk.bf16.vlgmr.msra.gmra.mxu0 %vm761_vm2, %v788_v53 }
 0x1d2   : > { %1894 = vmatpush3.bf16.xpose.msra.mxu1 %v933_v54  ;;  %1895 = vmatprep.mubr.msk.bf16.mxu1 %vm2066_vm0, %v2065_v2 }
 0x1d3   : > { %1901 = vmatprep.mubr.msk.bf16.mxu0 %vm2066_vm0, %v2065_v2  ;;  %1905 = vmatprep.subr.bf16.mxu1 %v2065_v2 }
 0x1d4   : > { %v789_v55 = vld [vmem:[#allocation2 + $0xc] sm:$0xf] }
 0x1d9   : > { %1896 = vmatmul.mubr.msk.bf16.vlgmr.msra.gmra.mxu1 %vm761_vm2, %v789_v55 }
 0x1da   : > { %1907 = vmatprep.mubr.msk.bf16.mxu1 %vm2066_vm0, %v2065_v2 }
 0x21e   : > { %v831_v57 = vpop.f32.mrf.mxu1 }
 0x21f   : > { %v2278_v58 = vsel %vm983_vm4, %v831_v57, -1e+30 }
 0x220   : > { %v1879_v59 = vpop.f32.mrf.mxu1  ;;  %v994_v60 = vsel %vm761_vm2, %v2278_v58, -inf }
 0x221   : > { %995 = vmax.xlane.f32.xlu1 %v994_v60 }
 0x222   : > { %v834_v62 = vpop.f32.mrf.mxu1 }
 0x224   : > { %v1880_v63 = vpop.f32.mrf.mxu1 }
 0x291   : > { %v877_v1 = vpop.f32.mrf.mxu1  ;;  %v923_v3 = vpop.f32.mrf.mxu0 }
 0x292   : > { %v987_v4 = vsel %vm983_vm4, %v877_v1, -1e+30  ;;  %v988_v10 = vsel %vm983_vm4, %v923_v3, -1e+30 }
 0x293   : > { %v1885_v5 = vpop.f32.mrf.mxu1  ;;  %v1891_v8 = vpop.f32.mrf.mxu0  ;;  %v997_v9 = vsel %vm761_vm2, %v987_v4, -inf  ;;  %v1000_v15 = vsel %vm761_vm2, %v988_v10, -inf }
 0x294   : > { %998 = vmax.xlane.f32.xlu0 %v997_v9 }
 0x295   : > { %v880_v11 = vpop.f32.mrf.mxu1  ;;  %v926_v12 = vpop.f32.mrf.mxu0 }
 0x297   : > { %v1886_v13 = vpop.f32.mrf.mxu1  ;;  %v1892_v14 = vpop.f32.mrf.mxu0 }
 0x298   : > { %1001 = vmax.xlane.f32.xlu0 %v1000_v15 }
 0x299   : > { %v969_v16 = vpop.f32.mrf.mxu1 }
 0x29a   : > { %v989_v17 = vsel %vm983_vm4, %v969_v16, -1e+30 }
 0x29b   : > { %v1897_v18 = vpop.f32.mrf.mxu1  ;;  %v1003_v19 = vsel %vm761_vm2, %v989_v17, -inf }
 0x29c   : > { %1004 = vmax.xlane.f32.xlu1 %v1003_v19  ;;  %v1055_v19 = vld [vmem:[#allocation4 + $0x8] sm:$0xff] }
 0x29d   : > { %v972_v20 = vpop.f32.mrf.mxu1 }
 0x29f   : > { %v1898_v22 = vpop.f32.mrf.mxu1 }
 0x2aa   : > { %v996_v24 = vpop.xlane.xlu1 %995 }
 0x2ab   : > { %v2306_v25 = vmax.f32 %v2303_v23, %v996_v24 }
 0x2ad   : > { %v1010_v26 = vsub.f32 %v2303_v23, %v2306_v25  ;;  %1308 = vst.msk [vmem:[#allocation3] sm:$0xff] %vm752_vm5, %v2306_v25 }
 0x2ae   : > { %1024 = vperm.xlu0 %1994, %v2306_v25  }
 0x2af   : > { %v1014_v18 = vmul.f32 1.442695, %v1010_v26 }
 0x31d   : > { %v999_v27 = vpop.xlane.xlu0 %998 }
 0x31e   : > { %v2316_v28 = vmax.f32 %v2313_v6, %v999_v27  ;;  %v1054_v27 = vld [vmem:[#allocation4] sm:$0xff] }
 0x320   : > { %v1011_v30 = vsub.f32 %v2313_v6, %v2316_v28  ;;  %1309 = vst.msk [vmem:[#allocation3 + $0x8] sm:$0xff] %vm752_vm5, %v2316_v28  ;;  %1029 = vperm.xlu1 %1995, %v2316_v28   ;;  %v1056_v6 = vld [vmem:[#allocation4 + $0x10] sm:$0xff] }
 0x321   : > { %v1002_v31 = vpop.xlane.xlu0 %1001 }
 0x322   : > { %v1008_v32 = vmax.f32 %v992_v29, %v1002_v31  ;;  %v1016_v11 = vmul.f32 1.442695, %v1011_v30 }
 0x324   : > { %v1012_v34 = vsub.f32 %v992_v29, %v1008_v32  ;;  %1310 = vst.msk [vmem:[#allocation3 + $0x10] sm:$0xff] %vm752_vm5, %v1008_v32  ;;  %1034 = vperm.xlu1 %1995, %v1008_v32  }
 0x325   : > { %v1005_v35 = vpop.xlane.xlu1 %1004 }
 0x326   : > { %v1009_v36 = vmax.f32 %v993_v33, %v1005_v35 }
 0x328   : > { %v1013_v39 = vsub.f32 %v993_v33, %v1009_v36  ;;  %1311 = vst.msk [vmem:[#allocation3 + $0x18] sm:$0xff] %vm752_vm5, %v1009_v36  ;;  %1039 = vperm.xlu1 %1995, %v1009_v36   ;;  %v1057_v33 = vld [vmem:[#allocation4 + $0x18] sm:$0xff] }
 0x329   : > { %v1025_v41 = vpop.permute.xlu0 %1024 }
 0x32a   : > { %v1042_v42 = vsub.f32 %v2278_v58, %v1025_v41  ;;  %v1018_v58 = vmul.f32 1.442695, %v1012_v34  ;;  %v1020_v3 = vmul.f32 1.442695, %v1013_v39 }
 0x32c   : > { %643 = vrot.lane.b32.xlu1 %v2233_v21, %s2064_s19  ;;  %v1046_v45 = vmul.f32 1.442695, %v1042_v42 }
 0x330   : > { %645 = vrot.lane.b32.xlu1 %v2244_v37, %s2064_s19 }
 0x334   : > { %647 = vrot.lane.b32.xlu1 %v2246_v38, %s2064_s19 }
 0x338   : > { %649 = vrot.lane.b32.xlu1 %v2252_v40, %s2064_s19 }
 0x39b   : > { %v1030_v43 = vpop.permute.xlu1 %1029 }
 0x39c   : > { %v1043_v44 = vsub.f32 %v987_v4, %v1030_v43 }
 0x39e   : > { %v1048_v46 = vmul.f32 1.442695, %v1043_v44 }
 0x39f   : > { %v1035_v47 = vpop.permute.xlu1 %1034 }
 0x3a0   : > { %2012 = vpow2.f32 %v1048_v46  ;;  %v1044_v48 = vsub.f32 %v988_v10, %v1035_v47  ;;  %v1084_v47 = vld [vmem:[#allocation5 + $0x8] sm:$0xff] }
 0x3a1   : > { %2014 = vpow2.f32 %v1046_v45 }
 0x3a2   : > { %v1050_v21 = vmul.f32 1.442695, %v1044_v48 }
 0x3a3   : > { %v1040_v49 = vpop.permute.xlu1 %1039 }
 0x3a4   : > { %2016 = vpow2.f32 %v1050_v21  ;;  %v1045_v37 = vsub.f32 %v989_v17, %v1040_v49 }
 0x3a6   : > { %v1052_v50 = vmul.f32 1.442695, %v1045_v37 }
 0x3a7   : > { %v644_v38 = vpop.permute.xlu1 %643 }
 0x3a8   : > { %2018 = vpow2.f32 %v1052_v50  ;;  %657 = vst.msk [vmem:[#allocation7] sm:$0xf] %vm626_vm3, %v644_v38  ;;  %v1085_v38 = vld [vmem:[#allocation5 + $0x10] sm:$0xff] }
 0x3a9   : > { %2020 = vpow2.f32 %v1018_v58 }
 0x3aa   : > { %2022 = vpow2.f32 %v1020_v3 }
 0x3ab   : > { %v646_v40 = vpop.permute.xlu1 %645  ;;  %2024 = vpow2.f32 %v1016_v11  ;;  %v2001_v11 = vld [vmem:[%s2477_s4] sm:$0xff]  }
 0x3ac   : > { %658 = vst.msk [vmem:[#allocation7 + $0x4] sm:$0xf] %vm626_vm3, %v646_v40  ;;  %2026 = vpow2.f32 %v1014_v18  ;;  %v1083_v18 = vld [vmem:[#allocation5] sm:$0xff] }
 0x3ad   : > { %v2013_v51 = vpop.eup %2012 }
 0x3ae   : > { %v1065_v52 = vsel %vm761_vm2, %v2013_v51, 0.0  ;;  %v2015_v53 = vpop.eup %2014  ;;  %v1112_v5 = vpack.c.bf16 %v2013_v51, %v2013_v51 }
 0x3af   : > { %1066 = vadd.xlane.f32.xlu1 %v1065_v52  ;;  %v648_v54 = vpop.permute.xlu1 %647  ;;  %v782_v55 = vld [vmem:[#allocation7] sm:$0xf]  ;;  %v1062_v59 = vsel %vm761_vm2, %v2015_v53, 0.0  ;;  %v1111_v61 = vpack.c.bf16 %v2015_v53, %v2015_v53 }
 0x3b0   : > { %659 = vst.msk [vmem:[#allocation7 + $0x8] sm:$0xf] %vm626_vm3, %v648_v54  ;;  %v1120_v56 = vsel %vm1118_vm6, %v782_v55, 0 }
 0x3b1   : > { %v2017_v57 = vpop.eup %2016  ;;  %1900 = vmatpush3.bf16.msra.mxu0 %v1120_v56 }
 0x3b2   : > { %v1068_v60 = vsel %vm761_vm2, %v2017_v57, 0.0  ;;  %1911 = vmatprep.subr.bf16.mxu0 %v2065_v2  ;;  %v1113_v10 = vpack.c.bf16 %v2017_v57, %v2017_v57  ;;  %v1086_v57 = vld [vmem:[#allocation5 + $0x18] sm:$0xff] }
 0x3b3   : > { %1063 = vadd.xlane.f32.xlu1 %v1062_v59  ;;  %1069 = vadd.xlane.f32.xlu0 %v1068_v60  ;;  %v650_v62 = vpop.permute.xlu1 %649  ;;  %v783_v63 = vld [vmem:[#allocation7 + $0x4] sm:$0xf] }
 0x3b4   : > { %660 = vst.msk [vmem:[#allocation7 + $0xc] sm:$0xf] %vm626_vm3, %v650_v62  ;;  %1902 = vmatmul.mubr.msk.bf16.vlgmr.msra.gmra.mxu0 %vm761_vm2, %v1111_v61  ;;  %v1166_v0 = vsel %vm1118_vm6, %v783_v63, 0 }
 0x3b5   : > { %v2019_v1 = vpop.eup %2018  ;;  %1906 = vmatpush3.bf16.msra.mxu1 %v1166_v0  ;;  %1913 = vmatprep.mubr.msk.bf16.mxu0 %vm2066_vm0, %v2065_v2 }
 0x3b6   : > { %v1071_v4 = vsel %vm761_vm2, %v2019_v1, 0.0  ;;  %1917 = vmatprep.subr.bf16.mxu1 %v2065_v2  ;;  %v1114_v14 = vpack.c.bf16 %v2019_v1, %v2019_v1  ;;  %v2021_v15 = vpop.eup %2020 }
 0x3b7   : > { %1072 = vadd.xlane.f32.xlu0 %v1071_v4  ;;  %v784_v8 = vld [vmem:[#allocation7 + $0x8] sm:$0xf]  ;;  %v2023_v16 = vpop.eup %2022  ;;  %v1060_v29 = vmul.f32 %v2021_v15, %v1056_v6 }
 0x3b8   : > { %1908 = vmatmul.mubr.msk.bf16.vlgmr.msra.gmra.mxu1 %vm761_vm2, %v1112_v5  ;;  %v1212_v9 = vsel %vm1118_vm6, %v784_v8, 0  ;;  %v2025_v17 = vpop.eup %2024  ;;  %v1061_v23 = vmul.f32 %v2023_v16, %v1057_v33 }
 0x3b9   : > { %1912 = vmatpush3.bf16.msra.mxu0 %v1212_v9  ;;  %1919 = vmatprep.mubr.msk.bf16.mxu1 %vm2066_vm0, %v2065_v2  ;;  %v1059_v20 = vmul.f32 %v2025_v17, %v1055_v19  ;;  %v2027_v22 = vpop.eup %2026 }
 0x3ba   : > { %1923 = vmatprep.subr.bf16.mxu0 %v2065_v2  ;;  %v1058_v30 = vmul.f32 %v2027_v22, %v1054_v27 }
 0x3bb   : > { %v785_v12 = vld [vmem:[#allocation7 + $0xc] sm:$0xf] }
 0x3bc   : > { %1914 = vmatmul.mubr.msk.bf16.vlgmr.msra.gmra.mxu0 %vm761_vm2, %v1113_v10  ;;  %v1258_v13 = vsel %vm1118_vm6, %v785_v12, 0  ;;  %v2000_v10 = vld [vmem:[%s2477_s4 + $0x8] sm:$0xff]  }
 0x3bd   : > { %1918 = vmatpush3.bf16.msra.mxu1 %v1258_v13  ;;  %1927 = vmatprep.mubr.msk.bf16.mxu0 %vm2066_vm0, %v2065_v2 }
 0x3be   : > { %1931 = vmatprep.subr.bf16.mxu1 %v2065_v2  ;;  %1924 = vmatpush3.bf16.msra.mxu0 %v2000_v10 }
 0x3bf   : > { %1925 = vmatprep.subr.bf16.mxu0 %v2065_v2 }
 0x3c0   : > { %1920 = vmatmul.mubr.msk.bf16.vlgmr.msra.gmra.mxu1 %vm761_vm2, %v1114_v14 }
 0x3c1   : > { %1935 = vmatprep.mubr.msk.bf16.mxu1 %vm2066_vm0, %v2065_v2 }
 0x3c2   : > { %1926 = vmatpush3.bf16.msra.mxu0 %v2001_v11 }
 0x3c3   : > { %1939 = vmatprep.subr.bf16.mxu0 %v2065_v2 }
 0x3c4   : > { %1099 = vperm.xlu1 %1995, %v2021_v15  }
 0x3c8   : > { %1104 = vperm.xlu1 %1995, %v2023_v16  }
 0x3cd   : > { %1094 = vperm.xlu0 %1994, %v2025_v17  }
 0x438   : > { %v1067_v24 = vpop.xlane.xlu1 %1066 }
 0x439   : > { %v1075_v28 = vadd.f32 %v1067_v24, %v1059_v20 }
 0x43b   : > { %1080 = vst.msk [vmem:[#allocation4 + $0x8] sm:$0xff] %vm752_vm5, %v1075_v28 }
 0x43c   : > { %v1070_v31 = vpop.xlane.xlu0 %1069  ;;  %v1064_v32 = vpop.xlane.xlu1 %1063 }
 0x43d   : > { %v1076_v34 = vadd.f32 %v1070_v31, %v1060_v29  ;;  %v1074_v35 = vadd.f32 %v1064_v32, %v1058_v30 }
 0x43f   : > { %1081 = vst.msk [vmem:[#allocation4 + $0x10] sm:$0xff] %vm752_vm5, %v1076_v34  ;;  %1079 = vst.msk [vmem:[#allocation4] sm:$0xff] %vm752_vm5, %v1074_v35 }
 0x440   : > { %v1073_v25 = vpop.xlane.xlu0 %1072  ;;  %v1100_v49 = vpop.permute.xlu1 %1099 }
 0x441   : > { %v1077_v26 = vadd.f32 %v1073_v25, %v1061_v23  ;;  %v1109_v55 = vmul.f32 %v1100_v49, %v1085_v38 }
 0x442   : > { %v1320_v36 = vld [vmem:[#allocation4 + $0x8] sm:$0xff] }
 0x443   : > { %1082 = vst.msk [vmem:[#allocation4 + $0x18] sm:$0xff] %vm752_vm5, %v1077_v26  ;;  %2028 = vrcp.f32 %v1320_v36  ;;  %v1374_v26 = vld [vmem:[%s2478_s5] sm:$0x1] }
 0x444   : > { %v1105_v56 = vpop.permute.xlu1 %1104  ;;  %v1375_v36 = vunpack.c.l.bf16 %v1374_v26 }
 0x445   : > { %v1110_v63 = vmul.f32 %v1105_v56, %v1086_v57  ;;  %v2007_v56 = vld [vmem:[%s2483_s10 + $0x20] sm:$0xff]   ;;  %v2008_v57 = vld [vmem:[%s2483_s10 + $0x18] sm:$0xff]  }
 0x446   : > { %v1321_v39 = vld [vmem:[#allocation4 + $0x10] sm:$0xff]  ;;  %v1319_v42 = vld [vmem:[#allocation4] sm:$0xff] }
 0x447   : > { %2030 = vrcp.f32 %v1321_v39  ;;  %v1436_v39 = vld [vmem:[%s2215_s22] sm:$0xf] }
 0x448   : > { %v1095_v48 = vpop.permute.xlu0 %1094 }
 0x449   : > { %v1108_v50 = vmul.f32 %v1095_v48, %v1084_v47 }
 0x44a   : > { %v1322_v41 = vld [vmem:[#allocation4 + $0x18] sm:$0xff] }
 0x44b   : > { %2032 = vrcp.f32 %v1322_v41  ;;  %v1379_v41 = vrot.slane %v1375_v36, %v2189_v7 }
 0x44c   : > { %2034 = vrcp.f32 %v1319_v42  ;;  %v1437_v42 = vunpack.c.l.bf16 %v1436_v39 }
 0x450   : > { %v2029_v43 = vpop.eup %2028 }
 0x451   : > { %1334 = vperm.xlu0 %1994, %v2029_v43  }
 0x454   : > { %v2031_v44 = vpop.eup %2030 }
 0x455   : > { %1339 = vperm.xlu1 %1995, %v2031_v44  }
 0x458   : > { %v2033_v45 = vpop.eup %2032 }
 0x459   : > { %1089 = vperm.xlu1 %1995, %v2027_v22   ;;  %1344 = vperm.xlu0 %1994, %v2033_v45   ;;  %v2035_v46 = vpop.eup %2034 }
 0x45d   : > { %1329 = vperm.xlu0 %1994, %v2035_v46  }
 0x474   : > { %v1156_v21 = vpop.f32.mrf.mxu0 }
 0x476   : > { %v1903_v37 = vpop.f32.mrf.mxu0 }
 0x478   : > { %v1159_v40 = vpop.f32.mrf.mxu0  ;;  %v1202_v51 = vpop.f32.mrf.mxu1 }
 0x479   : > { %v1301_v52 = vadd.f32 %v1202_v51, %v1108_v50  ;;  %v2002_v51 = vld [vmem:[%s2481_s8 + $0x8] sm:$0xff]  }
 0x47a   : > { %v1904_v53 = vpop.f32.mrf.mxu0  ;;  %v1909_v54 = vpop.f32.mrf.mxu1  ;;  %1932 = vmatpush3.bf16.msra.mxu1 %v2002_v51 }
 0x47b   : > { %1305 = vst.msk [vmem:[#allocation5 + $0x8] sm:$0xff] %vm761_vm2, %v1301_v52  ;;  %v2003_v52 = vld [vmem:[%s2481_s8] sm:$0xff]   ;;  %1933 = vmatprep.subr.bf16.mxu1 %v2065_v2  ;;  %v2004_v53 = vld [vmem:[%s2483_s10 + $0x38] sm:$0xff]   ;;  %v2005_v54 = vld [vmem:[%s2483_s10 + $0x30] sm:$0xff]  }
 0x47c   : > { %v1205_v58 = vpop.f32.mrf.mxu1  ;;  %v1248_v59 = vpop.f32.mrf.mxu0 }
 0x47d   : > { %v1302_v60 = vadd.f32 %v1248_v59, %v1109_v55  ;;  %v2006_v55 = vld [vmem:[%s2483_s10 + $0x28] sm:$0xff]   ;;  %v2009_v58 = vld [vmem:[%s2483_s10 + $0x10] sm:$0xff]  }
 0x47e   : > { %v1910_v61 = vpop.f32.mrf.mxu1  ;;  %v1915_v62 = vpop.f32.mrf.mxu0  ;;  %1934 = vmatpush3.bf16.msra.mxu1 %v2003_v52 }
 0x47f   : > { %1306 = vst.msk [vmem:[#allocation5 + $0x10] sm:$0xff] %vm761_vm2, %v1302_v60  ;;  %v1453_v62 = vld [vmem:[%s2479_s6] sm:$0x1] }
 0x480   : > { %v1251_v0 = vpop.f32.mrf.mxu0  ;;  %v1294_v1 = vpop.f32.mrf.mxu1 }
 0x481   : > { %v1303_v3 = vadd.f32 %v1294_v1, %v1110_v63  ;;  %v1460_v63 = vld [vmem:[%s2480_s7] sm:$0x1]  ;;  %v1454_v0 = vunpack.c.l.bf16 %v1453_v62 }
 0x482   : > { %v1916_v4 = vpop.f32.mrf.mxu0  ;;  %v1921_v5 = vpop.f32.mrf.mxu1  ;;  %v1316_v13 = vld [vmem:[#allocation5 + $0x8] sm:$0xff]  ;;  %v1461_v1 = vunpack.c.l.bf16 %v1460_v63 }
 0x483   : > { %1307 = vst.msk [vmem:[#allocation5 + $0x18] sm:$0xff] %vm761_vm2, %v1303_v3  ;;  %v1458_v3 = vrot.slane %v1454_v0, %v2189_v7 }
 0x484   : > { %v1297_v8 = vpop.f32.mrf.mxu1 }
 0x485   : > { %v1465_v8 = vrot.slane %v1461_v1, %v2189_v7 }
 0x486   : > { %v1922_v9 = vpop.f32.mrf.mxu1  ;;  %v1317_v15 = vld [vmem:[#allocation5 + $0x10] sm:$0xff] }
 0x48a   : > { %v1318_v20 = vld [vmem:[#allocation5 + $0x18] sm:$0xff] }
 0x4cc   : > { %v1335_v12 = vpop.permute.xlu0 %1334 }
 0x4cd   : > { %v1348_v14 = vmul.f32 %v1335_v12, %v1316_v13  ;;  %v2010_v12 = vld [vmem:[%s2483_s10 + $0x8] sm:$0xff]   ;;  %v2011_v13 = vld [vmem:[%s2483_s10] sm:$0xff]  }
 0x4cf   : > { %1352 = vrot.lane.b32.xlu1 %v1348_v14, %s2072_s20  ;;  %v1472_v14 = vld [vmem:[%s2482_s9] sm:$0x1] }
 0x4d0   : > { %v1340_v16 = vpop.permute.xlu1 %1339 }
 0x4d1   : > { %v1349_v17 = vmul.f32 %v1340_v16, %v1317_v15  ;;  %v1473_v15 = vunpack.c.l.bf16 %v1472_v14 }
 0x4d3   : > { %1356 = vrot.lane.b32.xlu0 %v1349_v17, %s2073_s21  ;;  %v1477_v16 = vrot.slane %v1473_v15, %v2189_v7 }
 0x4d4   : > { %v1345_v19 = vpop.permute.xlu0 %1344  ;;  %v1090_v22 = vpop.permute.xlu1 %1089 }
 0x4d5   : > { %v1350_v24 = vmul.f32 %v1345_v19, %v1318_v20  ;;  %v1107_v6 = vmul.f32 %v1090_v22, %v1083_v18 }
 0x4d7   : > { %v1300_v27 = vadd.f32 %v1156_v21, %v1107_v6  ;;  %1360 = vrot.lane.b32.xlu1 %v1350_v24, %s2074_s23 }
 0x4d8   : > { %v1330_v28 = vpop.permute.xlu0 %1329 }
 0x4d9   : > { %1304 = vst.msk [vmem:[#allocation5] sm:$0xff] %vm761_vm2, %v1300_v27 }
 0x4e0   : > { %v1315_v29 = vld [vmem:[#allocation5] sm:$0xff] }
 0x4e1   : > { %v1347_v31 = vmul.f32 %v1330_v28, %v1315_v29 }
 0x541   : > { %v1353_v30 = vpop.permute.xlu1 %1352 }
 0x542   : > { %v1364_v33 = vsel %vm761_vm2, %v1347_v31, %v1353_v30 }
 0x545   : > { %v1357_v32 = vpop.permute.xlu0 %1356 }
 0x546   : > { %v1366_v34 = vsel %vm1365_vm7, %v1364_v33, %v1357_v32 }
 0x549   : > { %v1361_v35 = vpop.permute.xlu1 %1360 }
 0x54a   : > { %v1368_v23 = vsel %vm1367_vm8, %v1366_v34, %v1361_v35 }
 0x54b   : > { %v1369_v25 = vpack.c.bf16 %v1368_v23, %v1368_v23 }
 0x54d   : > { %1928 = vmatmul.mubr.msk.bf16.vlgmr.msra.gmra.mxu0 %vm565_vm1, %v1369_v25 }
 0x54e   : > { %1955 = vmatprep.mubr.msk.bf16.mxu0 %vm2066_vm0, %v2065_v2  ;;  %1940 = vmatpush3.bf16.msra.mxu0 %v2004_v53 }
 0x54f   : > { %1941 = vmatprep.subr.bf16.mxu0 %v2065_v2 }
 0x552   : > { %1942 = vmatpush3.bf16.msra.mxu0 %v2005_v54 }
 0x553   : > { %1943 = vmatprep.subr.bf16.mxu0 %v2065_v2 }
 0x556   : > { %1944 = vmatpush3.bf16.msra.mxu0 %v2006_v55 }
 0x557   : > { %1945 = vmatprep.subr.bf16.mxu0 %v2065_v2 }
 0x55a   : > { %1946 = vmatpush3.bf16.msra.mxu0 %v2007_v56 }
 0x55b   : > { %1947 = vmatprep.subr.bf16.mxu0 %v2065_v2 }
 0x55e   : > { %1948 = vmatpush3.bf16.msra.mxu0 %v2008_v57 }
 0x55f   : > { %1949 = vmatprep.subr.bf16.mxu0 %v2065_v2 }
 0x562   : > { %1950 = vmatpush3.bf16.msra.mxu0 %v2009_v58 }
 0x563   : > { %1951 = vmatprep.subr.bf16.mxu0 %v2065_v2 }
 0x566   : > { %1952 = vmatpush3.bf16.msra.mxu0 %v2010_v12 }
 0x567   : > { %1953 = vmatprep.subr.bf16.mxu0 %v2065_v2  ;;  %v1551_v2 = vld [vmem:[%s2484_s11] sm:$0x1] }
 0x568   : > { %v1552_v27 = vunpack.c.l.bf16 %v1551_v2 }
 0x56a   : > { %1954 = vmatpush3.bf16.msra.mxu0 %v2011_v13  ;;  %v1556_v28 = vrot.slane %v1552_v27, %v2189_v7 }
 0x60d   : > { %v1430_v43 = vpop.f32.mrf.mxu0 }
 0x60e   : > { %v1431_v44 = vadd.f32 %v1430_v43, %v1379_v41 }
 0x60f   : > { %v1929_v45 = vpop.f32.mrf.mxu0 }
 0x610   : > { %v1438_v46 = vadd.f32 %v1437_v42, %v1431_v44  ;;  %v1659_v44 = vld [vmem:[%s2485_s12] sm:$0x1] }
 0x611   : > { %v1433_v47 = vpop.f32.mrf.mxu0  ;;  %v1666_v45 = vld [vmem:[%s2486_s13] sm:$0x1] }
 0x612   : > { %v1439_v48 = vsel %vm565_vm1, %v1438_v46, 0.0  ;;  %v1667_v47 = vunpack.c.l.bf16 %v1666_v45 }
 0x613   : > { %1440 = vadd.xlane.f32.xlu0 %v1439_v48  ;;  %v1930_v21 = vpop.f32.mrf.mxu0 }
 0x69c   : > { %v1441_v49 = vpop.xlane.xlu0 %1440 }
 0x69d   : > { %v1443_v37 = vmul.f32 0.03125, %v1441_v49  ;;  %v1671_v49 = vrot.slane %v1667_v47, %v2189_v7 }
 0x69f   : > { %v1444_v50 = vsub.f32 %v1438_v46, %v1443_v37  ;;  %v1660_v46 = vunpack.c.l.bf16 %v1659_v44 }
 0x6a1   : > { %v1445_v38 = vmul.f32 %v1444_v50, %v1444_v50  ;;  %v1664_v48 = vrot.slane %v1660_v46, %v2189_v7 }
 0x6a3   : > { %v1446_v40 = vsel %vm565_vm1, %v1445_v38, 0.0 }
 0x6a4   : > { %1447 = vadd.xlane.f32.xlu1 %v1446_v40 }
 0x72d   : > { %v1448_v59 = vpop.xlane.xlu1 %1447 }
 0x72e   : > { %v1449_v60 = vmul.f32 0.03125, %v1448_v59 }
 0x730   : > { %v1450_v61 = vadd.f32 1e-05, %v1449_v60 }
 0x732   : > { %2036 = vrsqrt.f32 %v1450_v61 }
 0x73f   : > { %v2037_v4 = vpop.eup %2036 }
 0x740   : > { %v1452_v5 = vmul.f32 %v2037_v4, %v1444_v50 }
 0x742   : > { %v1459_v9 = vmul.f32 %v1458_v3, %v1452_v5 }
 0x744   : > { %v1466_v10 = vadd.f32 %v1465_v8, %v1459_v9 }
 0x746   : > { %v1467_v11 = vpack.c.bf16 %v1466_v10, %v1466_v10 }
 0x748   : > { %1936 = vmatmul.mubr.msk.bf16.vlgmr.msra.gmra.mxu1 %vm565_vm1, %v1467_v11 }
 0x808   : > { %v1527_v17 = vpop.f32.mrf.mxu1 }
 0x809   : > { %v1528_v18 = vadd.f32 %v1527_v17, %v1477_v16 }
 0x80a   : > { %v1937_v19 = vpop.f32.mrf.mxu1 }
 0x80b   : > { %v1533_v20 = vmax.f32 %v1528_v18, 0.0 }
 0x80c   : > { %v1530_v22 = vpop.f32.mrf.mxu1 }
 0x80d   : > { %v1534_v24 = vpack.c.bf16 %v1533_v20, %v1533_v20 }
 0x80e   : > { %v1938_v6 = vpop.f32.mrf.mxu1 }
 0x80f   : > { %1956 = vmatmul.mubr.bf16.vlgmr.msra.gmra.mxu0 %v1534_v24 }
 0x8cf   : > { %v1639_v29 = vpop.f32.mrf.mxu0 }
 0x8d0   : > { %v1640_v30 = vadd.f32 %v1639_v29, %v1556_v28 }
 0x8d1   : > { %v1957_v31 = vpop.f32.mrf.mxu0 }
 0x8d2   : > { %v1645_v32 = vadd.f32 %v1640_v30, %v1466_v10 }
 0x8d3   : > { %v1642_v33 = vpop.f32.mrf.mxu0 }
 0x8d4   : > { %v1646_v34 = vsel %vm565_vm1, %v1645_v32, 0.0 }
 0x8d5   : > { %1647 = vadd.xlane.f32.xlu0 %v1646_v34  ;;  %v1958_v35 = vpop.f32.mrf.mxu0 }
 0x95e   : > { %v1648_v23 = vpop.xlane.xlu0 %1647 }
 0x95f   : > { %v1649_v25 = vmul.f32 0.03125, %v1648_v23 }
 0x961   : > { %v1650_v26 = vsub.f32 %v1645_v32, %v1649_v25 }
 0x963   : > { %v1651_v36 = vmul.f32 %v1650_v26, %v1650_v26 }
 0x965   : > { %v1652_v39 = vsel %vm565_vm1, %v1651_v36, 0.0 }
 0x966   : > { %1653 = vadd.xlane.f32.xlu0 %v1652_v39 }
 0x9ef   : > { %v1654_v41 = vpop.xlane.xlu0 %1653 }
 0x9f0   : > { %v1655_v42 = vmul.f32 0.03125, %v1654_v41 }
 0x9f2   : > { %v1656_v43 = vadd.f32 1e-05, %v1655_v42 }
 0x9f4   : > { %2038 = vrsqrt.f32 %v1656_v43 }
 0xa01   : > { %v2039_v21 = vpop.eup %2038 }
 0xa02   : > { %v1658_v37 = vmul.f32 %v2039_v21, %v1650_v26 }
 0xa04   : > { %v1665_v50 = vmul.f32 %v1664_v48, %v1658_v37 }
 0xa06   : > { %v1672_v38 = vadd.f32 %v1671_v49, %v1665_v50 }
 0xa08   : > { %v1673_v40 = vpack.c.bf16 %v1672_v38, %v1672_v38 }
 0xa0a   : > { %1675 = vst.msk [vmem:[%s528_s25] sm:$0xf] %vm1674_vm9, %v1673_v40 }
 0xa0b PF: > { %s24_s15 = sadd.s32 1, %s2062_s15   ;;  %s2488_s29 = smov %s2058_s30 }
 0xa0c   : > { %p21_p5 = scmp.ge.s32.totalorder %s24_s15, 4   ;;  %s2489_s30 = smov %s2491_s16 }
 0xa0e   :  { %23 = sbr.rel (!%p21_p5) target bundleno = 2 (0x2), region = 129 }

</bundles_post_ra>
